<compile_context>
chip_gen: v5e
topology: v5e:2x2
jax: 0.10.0
libtpu: 0.0.40
codegen_flags: <defaults>
</compile_context>

<pallas_src>
import functools

import jax
import jax.numpy as jnp
from jax.experimental import pallas as pl
from jax.experimental.pallas import tpu as pltpu


def _round_up(x, m):
    return (x + m - 1) // m * m


def _vmem_budget_bytes():
    """Generation-aware VMEM budget (v5e/v6e: 128 MiB physical, v7x: 64 MiB)."""
    cap = 64 * 1024 * 1024
    try:
        info = pltpu.get_tpu_info()
        cap = int(getattr(info, "vmem_capacity_bytes", cap))
    except Exception:
        pass
    if cap >= 96 * 1024 * 1024:          # 128-MiB-class parts (v5e / v6e)
        return 100 * 1024 * 1024
    return 44 * 1024 * 1024              # 64-MiB-class parts (v7x)


def _choose_tiling(B, I, H, w_bytes, io_bytes, budget):
    """Pick (Bp, Ip, Hp, Kp, tb, tn, tk).  Pads dims UP to the chosen tiles."""
    large = budget >= 96 * 1024 * 1024
    Ip = _round_up(I, 128)
    Hp0 = _round_up(H, 128)
    Bp0 = _round_up(max(B, 1), 16)       # 16-row alignment (bf16 native tiling)

    # Each extra batch tile re-streams the full fused weight, so prefer a big tb.
    tb = min(Bp0, 512 if large else 256)
    tn = min(Hp0, 1024 if large else 512)
    tk_cap = 2048 if large else 1024     # prefer collapsing the K grid entirely

    def pads(tb_, tn_, tk_cap_):
        Hp_ = _round_up(Hp0, tn_)
        k_raw = Ip + Hp_
        tk_ = min(k_raw, tk_cap_)
        Kp_ = _round_up(k_raw, tk_)
        Bp_ = _round_up(Bp0, tb_)
        return Bp_, Hp_, Kp_, tk_

    Bp, Hp, Kp, tk = pads(tb, tn, tk_cap)

    # v7x has two TensorCores: make sure the parallel grid has >= 2 points.
    if Bp // tb == 1 and Hp // tn == 1 and Hp0 >= 256:
        tn = max(128, ((Hp0 // 2) // 128) * 128)
        Bp, Hp, Kp, tk = pads(tb, tn, tk_cap)

    def gate_bytes(tb_, tn_, tk_):
        return (2 * tb_ * tk_ * w_bytes          # z block (double buffered)
                + 2 * tk_ * 4 * tn_ * w_bytes    # fused W block (streamed)
                + 2 * 4 * tn_ * 4                # fused bias
                + 2 * tb_ * tn_ * io_bytes       # ct block
                + 4 * tb_ * tn_ * io_bytes       # ht/ct output blocks
                + tb_ * 4 * tn_ * 4)             # f32 accumulator scratch

    while gate_bytes(tb, tn, tk) > budget:
        if tk > 512:
            tk_cap = max(512, ((tk // 2) // 128) * 128)
        elif tn > 256:
            tn = max(128, ((tn // 2) // 128) * 128)
        elif tb > 16:
            tb = max(16, ((tb // 2) // 16) * 16)
        else:
            break
        Bp, Hp, Kp, tk = pads(tb, tn, tk_cap)

    return Bp, Ip, Hp, Kp, tb, tn, tk


# --------------------------------------------------------------------------
# Phase 1: mogrification.  Per batch tile, Q/R resident in VMEM.
# Writes z = [xt_mog | ht_mog | 0-tail] (packed along K) in the weight dtype.
# --------------------------------------------------------------------------
def mogrify_kernel(xt_ref, ht_ref, q_ref, r_ref, z_ref, *,
                   mog_iterations: int, i_pad: int, h_pad: int, k_pad: int):
    mm_dtype = q_ref.dtype               # matmul operand dtype (bf16 params ok)
    xt = xt_ref[...].astype(jnp.float32)
    ht = ht_ref[...].astype(jnp.float32)

    # Static unroll; sequential data dependence between rounds.
    # 2*sigmoid(v) == 1 + tanh(v/2): single EUP op, no 2x VPU multiply.
    for i in range(1, mog_iterations + 1):
        if i % 2 == 0:
            v = jnp.dot(xt.astype(mm_dtype), r_ref[...],
                        preferred_element_type=jnp.float32)
            ht = (1.0 + jnp.tanh(0.5 * v)) * ht
        else:
            v = jnp.dot(ht.astype(mm_dtype), q_ref[...],
                        preferred_element_type=jnp.float32)
            xt = (1.0 + jnp.tanh(0.5 * v)) * xt

    # i_pad / h_pad are multiples of 128 -> lane-aligned stores.
    z_ref[:, :i_pad] = xt.astype(z_ref.dtype)
    z_ref[:, i_pad:i_pad + h_pad] = ht.astype(z_ref.dtype)
    tail = k_pad - i_pad - h_pad
    if tail > 0:                           # zero the K padding (static branch)
        z_ref[:, i_pad + h_pad:] = jnp.zeros((xt.shape[0], tail), z_ref.dtype)


# --------------------------------------------------------------------------
# Phase 2: fused gate matmul + LSTM elementwise epilogue.
# One wide (tb,tk)x(tk,4*tn) dot per K step into a single f32 accumulator.
# Grid = (B/tb, H/tn, K/tk); K is the reduction axis (innermost, "arbitrary").
# --------------------------------------------------------------------------
def gate_kernel(z_ref, w_ref, b_ref, ct_ref, ht_out_ref, ct_out_ref, acc_ref,
                *, tn: int):
    k = pl.program_id(2)

    @pl.when(k == 0)
    def _():
        acc_ref[...] = jnp.zeros_like(acc_ref)

    acc_ref[...] += jnp.dot(z_ref[...], w_ref[...],
                            preferred_element_type=jnp.float32)

    @pl.when(k == pl.num_programs(2) - 1)
    def _():
        gates = acc_ref[...] + b_ref[...]            # (tb, 4*tn) f32
        ig = gates[:, 0 * tn:1 * tn]                  # lane-aligned slices
        fg = gates[:, 1 * tn:2 * tn]
        cg = gates[:, 2 * tn:3 * tn]
        og = gates[:, 3 * tn:4 * tn]

        ct = ct_ref[...].astype(jnp.float32)
        ct_new = jax.nn.sigmoid(fg) * ct + jax.nn.sigmoid(ig) * jnp.tanh(cg)
        ht_new = jax.nn.sigmoid(og) * jnp.tanh(ct_new)

        ht_out_ref[...] = ht_new.astype(ht_out_ref.dtype)
        ct_out_ref[...] = ct_new.astype(ct_out_ref.dtype)


# --------------------------------------------------------------------------
# Wrapper reproducing MogLSTMCell.forward; returns (ht, (ht, ct)).
# --------------------------------------------------------------------------
@functools.partial(jax.jit, static_argnames=("mog_iterations", "single_buffer_qr"))
def mog_lstm_cell(xt, params, init_states=None, *, mog_iterations: int,
                  single_buffer_qr: bool = True):
    Wih, Whh, bih, bhh, Q, R = (params["Wih"], params["Whh"], params["bih"],
                                params["bhh"], params["Q"], params["R"])
    B, I = xt.shape
    H = Whh.shape[0]
    out_dtype = xt.dtype
    w_dtype = Wih.dtype                  # matmuls run in the parameter dtype

    if init_states is None:
        ht = jnp.zeros((B, H), xt.dtype)
        ct = jnp.zeros((B, H), xt.dtype)
    else:
        ht, ct = init_states
        ht = jnp.broadcast_to(ht, (B, H)).astype(xt.dtype)
        ct = jnp.broadcast_to(ct, (B, H)).astype(xt.dtype)

    budget = _vmem_budget_bytes()
    w_bytes = jnp.dtype(w_dtype).itemsize
    io_bytes = jnp.dtype(out_dtype).itemsize
    Bp, Ip, Hp, Kp, tb, tn, tk = _choose_tiling(B, I, H, w_bytes, io_bytes, budget)

    # ---- pad everything lane-dense (multiples of the chosen tiles) ----------
    xt_p = jnp.pad(xt, ((0, Bp - B), (0, Ip - I)))
    ht_p = jnp.pad(ht, ((0, Bp - B), (0, Hp - H)))
    ct_p = jnp.pad(ct, ((0, Bp - B), (0, Hp - H)))
    Q_p = jnp.pad(Q.astype(w_dtype), ((0, Hp - H), (0, Ip - I)))
    R_p = jnp.pad(R.astype(w_dtype), ((0, Ip - I), (0, Hp - H)))

    # Fused weights, gate-minor per tn output block:
    #   W_pack[k, j*4*tn + g*tn + c] = Wg[g, k, j*tn + c]
    # so the gate kernel does one (tb,tk)x(tk,4*tn) dot and slices gates
    # lane-aligned.  (Packing cost is wrapper-side XLA; params would normally
    # be packed once offline.)
    nb = Hp // tn
    Wg = jnp.zeros((4, Kp, Hp), w_dtype)
    Wg = Wg.at[:, :I, :H].set(
        Wih.astype(w_dtype).reshape(I, 4, H).transpose(1, 0, 2))
    Wg = Wg.at[:, Ip:Ip + H, :H].set(
        Whh.astype(w_dtype).reshape(H, 4, H).transpose(1, 0, 2))
    W_pack = Wg.reshape(4, Kp, nb, tn).transpose(1, 2, 0, 3).reshape(Kp, 4 * Hp)

    bg = jnp.pad((bih + bhh).astype(jnp.float32).reshape(4, H),
                 ((0, 0), (0, Hp - H)))
    b_pack = bg.reshape(4, nb, tn).transpose(1, 0, 2).reshape(1, 4 * Hp)

    # ---- phase 1: mogrification --------------------------------------------
    # Q/R have a constant index_map; single-buffer them to halve their VMEM
    # footprint (matters on v7x's 64 MiB).
    # TODO(synk): for very large I/H (Q/R no longer fitting VMEM), stream Q/R
    # in column blocks per round with an inner pltpu.emit_pipeline.
    qr_mode = dict(pipeline_mode=pl.Buffered(1)) if single_buffer_qr else {}

    z = pl.pallas_call(
        functools.partial(mogrify_kernel, mog_iterations=mog_iterations,
                          i_pad=Ip, h_pad=Hp, k_pad=Kp),
        out_shape=jax.ShapeDtypeStruct((Bp, Kp), w_dtype),
        grid_spec=pltpu.PrefetchScalarGridSpec(
            num_scalar_prefetch=0,
            grid=(Bp // tb,),
            in_specs=[
                pl.BlockSpec((tb, Ip), lambda i: (i, 0)),
                pl.BlockSpec((tb, Hp), lambda i: (i, 0)),
                pl.BlockSpec((Hp, Ip), lambda i: (0, 0), **qr_mode),
                pl.BlockSpec((Ip, Hp), lambda i: (0, 0), **qr_mode),
            ],
            out_specs=pl.BlockSpec((tb, Kp), lambda i: (i, 0)),
        ),
        compiler_params=pltpu.CompilerParams(
            dimension_semantics=("parallel",),
            vmem_limit_bytes=budget),
    )(xt_p, ht_p, Q_p, R_p)

    # ---- phase 2: fused gate matmul + LSTM epilogue -------------------------
    ht_out_p, ct_out_p = pl.pallas_call(
        functools.partial(gate_kernel, tn=tn),
        out_shape=(jax.ShapeDtypeStruct((Bp, Hp), out_dtype),
                   jax.ShapeDtypeStruct((Bp, Hp), out_dtype)),
        grid_spec=pltpu.PrefetchScalarGridSpec(
            num_scalar_prefetch=0,
            grid=(Bp // tb, Hp // tn, Kp // tk),
            in_specs=[
                pl.BlockSpec((tb, tk), lambda i, j, k: (i, k)),        # z
                pl.BlockSpec((tk, 4 * tn), lambda i, j, k: (k, j)),    # fused W
                pl.BlockSpec((1, 4 * tn), lambda i, j, k: (0, j)),     # fused bias
                pl.BlockSpec((tb, tn), lambda i, j, k: (i, j)),        # ct
            ],
            out_specs=(
                pl.BlockSpec((tb, tn), lambda i, j, k: (i, j)),
                pl.BlockSpec((tb, tn), lambda i, j, k: (i, j)),
            ),
            scratch_shapes=[pltpu.VMEM((tb, 4 * tn), jnp.float32)],
        ),
        compiler_params=pltpu.CompilerParams(
            dimension_semantics=("parallel", "parallel", "arbitrary"),
            vmem_limit_bytes=budget),
    )(z, W_pack, b_pack, ct_p)

    ht_out = ht_out_p[:B, :H]
    ct_out = ct_out_p[:B, :H]
    return ht_out, (ht_out, ct_out)


def _run_cell(xt, params, states, mog_iterations):
    """Call the kernel; fall back to default buffering if pl.Buffered(1) on the
    resident Q/R inputs is rejected by this JAX/Mosaic version."""
    try:
        out = mog_lstm_cell(xt, params, states, mog_iterations=mog_iterations,
                            single_buffer_qr=True)
        jax.block_until_ready(out)
        return out
    except Exception:
        out = mog_lstm_cell(xt, params, states, mog_iterations=mog_iterations,
                            single_buffer_qr=False)
        jax.block_until_ready(out)
        return out


# --------------------------------------------------------------------------
# Init + pure-JAX reference (mirrors the PyTorch module) for validation.
# --------------------------------------------------------------------------
def xavier_normal(key, shape, dtype=jnp.float32):
    fan_in, fan_out = shape[0], shape[1]
    std = jnp.sqrt(2.0 / (fan_in + fan_out))
    return (jax.random.normal(key, shape, dtype=jnp.float32) * std).astype(dtype)


def init_params(key, input_size, hidden_size, dtype=jnp.float32):
    k1, k2, k3, k4 = jax.random.split(key, 4)
    return {
        "Wih": xavier_normal(k1, (input_size, hidden_size * 4), dtype),
        "Whh": xavier_normal(k2, (hidden_size, hidden_size * 4), dtype),
        "bih": jnp.zeros((hidden_size * 4,), dtype),
        "bhh": jnp.zeros((hidden_size * 4,), dtype),
        "Q": xavier_normal(k3, (hidden_size, input_size), dtype),
        "R": xavier_normal(k4, (input_size, hidden_size), dtype),
    }


def mog_lstm_reference(xt, params, init_states, *, mog_iterations):
    Wih, Whh, bih, bhh, Q, R = (params["Wih"], params["Whh"], params["bih"],
                                params["bhh"], params["Q"], params["R"])
    ht, ct = init_states
    for i in range(1, mog_iterations + 1):
        if i % 2 == 0:
            ht = 2 * jax.nn.sigmoid(xt @ R) * ht
        else:
            xt = 2 * jax.nn.sigmoid(ht @ Q) * xt
    gates = xt @ Wih + bih + (ht @ Whh + bhh)
    H = Whh.shape[0]
    ingate, forgetgate, cellgate, outgate = (gates[:, :H], gates[:, H:2 * H],
                                             gates[:, 2 * H:3 * H], gates[:, 3 * H:])
    ft = jax.nn.sigmoid(forgetgate)
    it = jax.nn.sigmoid(ingate)
    ct_candidate = jnp.tanh(cellgate)
    ot = jax.nn.sigmoid(outgate)
    ct = ft * ct + it * ct_candidate
    ht = ot * jnp.tanh(ct)
    return ht, (ht, ct)


if __name__ == "__main__":
    key = jax.random.PRNGKey(0)

    # Test 1: the canonical small case.
    B, I, H, MOG = 8, 32, 32, 5
    k_param, k_x, k_h, k_c, key = jax.random.split(key, 5)
    params = init_params(k_param, I, H)
    xt = jax.random.normal(k_x, (B, I), dtype=jnp.float32)
    h0 = jax.random.normal(k_h, (B, H), dtype=jnp.float32)
    c0 = jax.random.normal(k_c, (B, H), dtype=jnp.float32)

    ht, (_, ct) = _run_cell(xt, params, (h0, c0), MOG)
    ht_ref, (_, ct_ref) = mog_lstm_reference(xt, params, (h0, c0),
                                             mog_iterations=MOG)
    assert jnp.allclose(ht, ht_ref, atol=2e-4, rtol=2e-4), "ht mismatch (test 1)"
    assert jnp.allclose(ct, ct_ref, atol=2e-4, rtol=2e-4), "ct mismatch (test 1)"

    # Test 2: awkward, non-multiple-of-128 sizes (exercises padding paths).
    B2, I2, H2, MOG2 = 4, 40, 72, 4
    k_param2, k_x2, k_h2, k_c2, key = jax.random.split(key, 5)
    params2 = init_params(k_param2, I2, H2)
    xt2 = jax.random.normal(k_x2, (B2, I2), dtype=jnp.float32)
    h02 = jax.random.normal(k_h2, (B2, H2), dtype=jnp.float32)
    c02 = jax.random.normal(k_c2, (B2, H2), dtype=jnp.float32)

    ht2, (_, ct2) = _run_cell(xt2, params2, (h02, c02), MOG2)
    ht2_ref, (_, ct2_ref) = mog_lstm_reference(xt2, params2, (h02, c02),
                                               mog_iterations=MOG2)
    assert jnp.allclose(ht2, ht2_ref, atol=2e-4, rtol=2e-4), "ht mismatch (test 2)"
    assert jnp.allclose(ct2, ct2_ref, atol=2e-4, rtol=2e-4), "ct mismatch (test 2)"

    print("KERNEL_OK")
</pallas_src>

<mosaic_0001>
module attributes {stable_mosaic.version = 11 : i64} {
  func.func @gate_kernel(%arg0: i32, %arg1: i32, %arg2: i32, %arg3: memref<16x256xf32, #tpu.memory_space<vmem>>, %arg4: memref<256x512xf32, #tpu.memory_space<vmem>>, %arg5: memref<1x512xf32, #tpu.memory_space<vmem>>, %arg6: memref<16x128xf32, #tpu.memory_space<vmem>>, %arg7: memref<16x128xf32, #tpu.memory_space<vmem>>, %arg8: memref<16x128xf32, #tpu.memory_space<vmem>>, %arg9: memref<16x512xf32, #tpu.memory_space<vmem>>) attributes {dimension_semantics = [#tpu.dimension_semantics<parallel>, #tpu.dimension_semantics<parallel>, #tpu.dimension_semantics<arbitrary>], iteration_bounds = array<i64: 1, 1, 1>, scalar_prefetch = 0 : i64, scratch_operands = 1 : i64, tpu.core_type = #tpu.core_type<tc>, window_params = [{transform_indices = @transform_0, window_bounds = array<i64: 16, 256>}, {transform_indices = @transform_1, window_bounds = array<i64: 256, 512>}, {transform_indices = @transform_2, window_bounds = array<i64: 1, 512>}, {transform_indices = @transform_3, window_bounds = array<i64: 16, 128>}, {transform_indices = @transform_4, window_bounds = array<i64: 16, 128>}, {transform_indices = @transform_5, window_bounds = array<i64: 16, 128>}]} {
    %c0_i32 = arith.constant 0 : i32
    %0 = arith.cmpi eq, %arg2, %c0_i32 : i32
    %1 = arith.extui %0 : i1 to i32
    %c0_i32_0 = arith.constant 0 : i32
    %2 = arith.cmpi ne, %1, %c0_i32_0 : i32
    scf.if %2 {
      %cst_10 = arith.constant 0.000000e+00 : f32
      %12 = vector.broadcast %cst_10 : f32 to vector<16x512xf32>
      %c0_11 = arith.constant 0 : index
      %c0_12 = arith.constant 0 : index
      %13 = vector.load %arg9[%c0_11, %c0_12] : memref<16x512xf32, #tpu.memory_space<vmem>>, vector<16x512xf32>
      tpu.vector_store %arg9[%c0_11, %c0_12], %12 {strides = array<i32>} : memref<16x512xf32, #tpu.memory_space<vmem>>, vector<16x512xf32>,
    } else {
    }
    %c0 = arith.constant 0 : index
    %c0_1 = arith.constant 0 : index
    %3 = vector.load %arg9[%c0, %c0_1] : memref<16x512xf32, #tpu.memory_space<vmem>>, vector<16x512xf32>
    %c0_2 = arith.constant 0 : index
    %c0_3 = arith.constant 0 : index
    %4 = vector.load %arg3[%c0_2, %c0_3] : memref<16x256xf32, #tpu.memory_space<vmem>>, vector<16x256xf32>
    %c0_4 = arith.constant 0 : index
    %c0_5 = arith.constant 0 : index
    %5 = vector.load %arg4[%c0_4, %c0_5] : memref<256x512xf32, #tpu.memory_space<vmem>>, vector<256x512xf32>
    %cst = arith.constant dense<0.000000e+00> : vector<16x512xf32>
    %6 = tpu.matmul %4, %5, %cst {dimension_numbers = #tpu.dot_dimension_numbers<[1], [0], [0], [1], [0, 0, 1, 1], [], []>} : vector<16x256xf32>, vector<256x512xf32>, vector<16x512xf32> -> vector<16x512xf32>
    %7 = arith.addf %3, %6 : vector<16x512xf32>
    %c0_6 = arith.constant 0 : index
    %c0_7 = arith.constant 0 : index
    %8 = vector.load %arg9[%c0_6, %c0_7] : memref<16x512xf32, #tpu.memory_space<vmem>>, vector<16x512xf32>
    tpu.vector_store %arg9[%c0_6, %c0_7], %7 {strides = array<i32>} : memref<16x512xf32, #tpu.memory_space<vmem>>, vector<16x512xf32>,
    %c0_i32_8 = arith.constant 0 : i32
    %9 = arith.cmpi eq, %arg2, %c0_i32_8 : i32
    %10 = arith.extui %9 : i1 to i32
    %c0_i32_9 = arith.constant 0 : i32
    %11 = arith.cmpi ne, %10, %c0_i32_9 : i32
    scf.if %11 {
      %c0_10 = arith.constant 0 : index
      %c0_11 = arith.constant 0 : index
      %12 = vector.load %arg9[%c0_10, %c0_11] : memref<16x512xf32, #tpu.memory_space<vmem>>, vector<16x512xf32>
      %c0_12 = arith.constant 0 : index
      %c0_13 = arith.constant 0 : index
      %13 = vector.load %arg5[%c0_12, %c0_13] : memref<1x512xf32, #tpu.memory_space<vmem>>, vector<1x512xf32>
      %14 = vector.broadcast %13 : vector<1x512xf32> to vector<16x512xf32>
      %15 = arith.addf %12, %14 : vector<16x512xf32>
      %16 = vector.extract_strided_slice %15 {offsets = [0, 0], sizes = [16, 128], strides = [1, 1]} : vector<16x512xf32> to vector<16x128xf32>
      %17 = vector.extract_strided_slice %15 {offsets = [0, 128], sizes = [16, 128], strides = [1, 1]} : vector<16x512xf32> to vector<16x128xf32>
      %18 = vector.extract_strided_slice %15 {offsets = [0, 256], sizes = [16, 128], strides = [1, 1]} : vector<16x512xf32> to vector<16x128xf32>
      %19 = vector.extract_strided_slice %15 {offsets = [0, 384], sizes = [16, 128], strides = [1, 1]} : vector<16x512xf32> to vector<16x128xf32>
      %c0_14 = arith.constant 0 : index
      %c0_15 = arith.constant 0 : index
      %20 = vector.load %arg6[%c0_14, %c0_15] : memref<16x128xf32, #tpu.memory_space<vmem>>, vector<16x128xf32>
      %21 = arith.negf %17 : vector<16x128xf32>
      %22 = math.exp %21 : vector<16x128xf32>
      %cst_16 = arith.constant 1.000000e+00 : f32
      %23 = vector.broadcast %cst_16 : f32 to vector<16x128xf32>
      %24 = arith.addf %23, %22 : vector<16x128xf32>
      %25 = arith.divf %23, %24 : vector<16x128xf32>
      %26 = arith.mulf %25, %20 : vector<16x128xf32>
      %27 = arith.negf %16 : vector<16x128xf32>
      %28 = math.exp %27 : vector<16x128xf32>
      %cst_17 = arith.constant 1.000000e+00 : f32
      %29 = vector.broadcast %cst_17 : f32 to vector<16x128xf32>
      %30 = arith.addf %29, %28 : vector<16x128xf32>
      %31 = arith.divf %29, %30 : vector<16x128xf32>
      %32 = math.tanh %18 : vector<16x128xf32>
      %33 = arith.mulf %31, %32 : vector<16x128xf32>
      %34 = arith.addf %26, %33 : vector<16x128xf32>
      %35 = arith.negf %19 : vector<16x128xf32>
      %36 = math.exp %35 : vector<16x128xf32>
      %cst_18 = arith.constant 1.000000e+00 : f32
      %37 = vector.broadcast %cst_18 : f32 to vector<16x128xf32>
      %38 = arith.addf %37, %36 : vector<16x128xf32>
      %39 = arith.divf %37, %38 : vector<16x128xf32>
      %40 = math.tanh %34 : vector<16x128xf32>
      %41 = arith.mulf %39, %40 : vector<16x128xf32>
      %c0_19 = arith.constant 0 : index
      %c0_20 = arith.constant 0 : index
      %42 = vector.load %arg7[%c0_19, %c0_20] : memref<16x128xf32, #tpu.memory_space<vmem>>, vector<16x128xf32>
      tpu.vector_store %arg7[%c0_19, %c0_20], %41 {strides = array<i32>} : memref<16x128xf32, #tpu.memory_space<vmem>>, vector<16x128xf32>,
      %c0_21 = arith.constant 0 : index
      %c0_22 = arith.constant 0 : index
      %43 = vector.load %arg8[%c0_21, %c0_22] : memref<16x128xf32, #tpu.memory_space<vmem>>, vector<16x128xf32>
      tpu.vector_store %arg8[%c0_21, %c0_22], %34 {strides = array<i32>} : memref<16x128xf32, #tpu.memory_space<vmem>>, vector<16x128xf32>,
    } else {
    }
    return
  }
  func.func @transform_0(%arg0: i32, %arg1: i32, %arg2: i32) -> (i32, i32) {
    %c0_i32 = arith.constant 0 : i32
    return %arg0, %arg2 : i32, i32
  }
  func.func @transform_1(%arg0: i32, %arg1: i32, %arg2: i32) -> (i32, i32) {
    %c0_i32 = arith.constant 0 : i32
    return %arg2, %arg1 : i32, i32
  }
  func.func @transform_2(%arg0: i32, %arg1: i32, %arg2: i32) -> (i32, i32) {
    %c0_i32 = arith.constant 0 : i32
    %c0_i32_0 = arith.constant 0 : i32
    return %c0_i32, %arg1 : i32, i32
  }
  func.func @transform_3(%arg0: i32, %arg1: i32, %arg2: i32) -> (i32, i32) {
    %c0_i32 = arith.constant 0 : i32
    return %arg0, %arg1 : i32, i32
  }
  func.func @transform_4(%arg0: i32, %arg1: i32, %arg2: i32) -> (i32, i32) {
    %c0_i32 = arith.constant 0 : i32
    return %arg0, %arg1 : i32, i32
  }
  func.func @transform_5(%arg0: i32, %arg1: i32, %arg2: i32) -> (i32, i32) {
    %c0_i32 = arith.constant 0 : i32
    return %arg0, %arg1 : i32, i32
  }
}

module attributes {stable_mosaic.version = 11 : i64} {
  func.func @mogrify_kernel(%arg0: i32, %arg1: memref<16x128xf32, #tpu.memory_space<vmem>>, %arg2: memref<16x128xf32, #tpu.memory_space<vmem>>, %arg3: memref<128x128xf32, #tpu.memory_space<vmem>>, %arg4: memref<128x128xf32, #tpu.memory_space<vmem>>, %arg5: memref<16x256xf32, #tpu.memory_space<vmem>>) attributes {dimension_semantics = [#tpu.dimension_semantics<parallel>], iteration_bounds = array<i64: 1>, scalar_prefetch = 0 : i64, scratch_operands = 0 : i64, tpu.core_type = #tpu.core_type<tc>, window_params = [{transform_indices = @transform_0, window_bounds = array<i64: 16, 128>}, {transform_indices = @transform_1, window_bounds = array<i64: 16, 128>}, {pipeline_mode = #tpu.pipeline_mode<synchronous>, transform_indices = @transform_2, window_bounds = array<i64: 128, 128>}, {pipeline_mode = #tpu.pipeline_mode<synchronous>, transform_indices = @transform_3, window_bounds = array<i64: 128, 128>}, {transform_indices = @transform_4, window_bounds = array<i64: 16, 256>}]} {
    %c0 = arith.constant 0 : index
    %c0_0 = arith.constant 0 : index
    %0 = vector.load %arg1[%c0, %c0_0] : memref<16x128xf32, #tpu.memory_space<vmem>>, vector<16x128xf32>
    %c0_1 = arith.constant 0 : index
    %c0_2 = arith.constant 0 : index
    %1 = vector.load %arg2[%c0_1, %c0_2] : memref<16x128xf32, #tpu.memory_space<vmem>>, vector<16x128xf32>
    %c0_3 = arith.constant 0 : index
    %c0_4 = arith.constant 0 : index
    %2 = vector.load %arg3[%c0_3, %c0_4] : memref<128x128xf32, #tpu.memory_space<vmem>>, vector<128x128xf32>
    %cst = arith.constant dense<0.000000e+00> : vector<16x128xf32>
    %3 = tpu.matmul %1, %2, %cst {dimension_numbers = #tpu.dot_dimension_numbers<[1], [0], [0], [1], [0, 0, 1, 1], [], []>} : vector<16x128xf32>, vector<128x128xf32>, vector<16x128xf32> -> vector<16x128xf32>
    %cst_5 = arith.constant 5.000000e-01 : f32
    %4 = vector.broadcast %cst_5 : f32 to vector<16x128xf32>
    %5 = arith.mulf %4, %3 : vector<16x128xf32>
    %6 = math.tanh %5 : vector<16x128xf32>
    %cst_6 = arith.constant 1.000000e+00 : f32
    %7 = vector.broadcast %cst_6 : f32 to vector<16x128xf32>
    %8 = arith.addf %7, %6 : vector<16x128xf32>
    %9 = arith.mulf %8, %0 : vector<16x128xf32>
    %c0_7 = arith.constant 0 : index
    %c0_8 = arith.constant 0 : index
    %10 = vector.load %arg4[%c0_7, %c0_8] : memref<128x128xf32, #tpu.memory_space<vmem>>, vector<128x128xf32>
    %cst_9 = arith.constant dense<0.000000e+00> : vector<16x128xf32>
    %11 = tpu.matmul %9, %10, %cst_9 {dimension_numbers = #tpu.dot_dimension_numbers<[1], [0], [0], [1], [0, 0, 1, 1], [], []>} : vector<16x128xf32>, vector<128x128xf32>, vector<16x128xf32> -> vector<16x128xf32>
    %cst_10 = arith.constant 5.000000e-01 : f32
    %12 = vector.broadcast %cst_10 : f32 to vector<16x128xf32>
    %13 = arith.mulf %12, %11 : vector<16x128xf32>
    %14 = math.tanh %13 : vector<16x128xf32>
    %cst_11 = arith.constant 1.000000e+00 : f32
    %15 = vector.broadcast %cst_11 : f32 to vector<16x128xf32>
    %16 = arith.addf %15, %14 : vector<16x128xf32>
    %17 = arith.mulf %16, %1 : vector<16x128xf32>
    %c0_12 = arith.constant 0 : index
    %c0_13 = arith.constant 0 : index
    %18 = vector.load %arg3[%c0_12, %c0_13] : memref<128x128xf32, #tpu.memory_space<vmem>>, vector<128x128xf32>
    %cst_14 = arith.constant dense<0.000000e+00> : vector<16x128xf32>
    %19 = tpu.matmul %17, %18, %cst_14 {dimension_numbers = #tpu.dot_dimension_numbers<[1], [0], [0], [1], [0, 0, 1, 1], [], []>} : vector<16x128xf32>, vector<128x128xf32>, vector<16x128xf32> -> vector<16x128xf32>
    %cst_15 = arith.constant 5.000000e-01 : f32
    %20 = vector.broadcast %cst_15 : f32 to vector<16x128xf32>
    %21 = arith.mulf %20, %19 : vector<16x128xf32>
    %22 = math.tanh %21 : vector<16x128xf32>
    %cst_16 = arith.constant 1.000000e+00 : f32
    %23 = vector.broadcast %cst_16 : f32 to vector<16x128xf32>
    %24 = arith.addf %23, %22 : vector<16x128xf32>
    %25 = arith.mulf %24, %9 : vector<16x128xf32>
    %c0_17 = arith.constant 0 : index
    %c0_18 = arith.constant 0 : index
    %26 = vector.load %arg4[%c0_17, %c0_18] : memref<128x128xf32, #tpu.memory_space<vmem>>, vector<128x128xf32>
    %cst_19 = arith.constant dense<0.000000e+00> : vector<16x128xf32>
    %27 = tpu.matmul %25, %26, %cst_19 {dimension_numbers = #tpu.dot_dimension_numbers<[1], [0], [0], [1], [0, 0, 1, 1], [], []>} : vector<16x128xf32>, vector<128x128xf32>, vector<16x128xf32> -> vector<16x128xf32>
    %cst_20 = arith.constant 5.000000e-01 : f32
    %28 = vector.broadcast %cst_20 : f32 to vector<16x128xf32>
    %29 = arith.mulf %28, %27 : vector<16x128xf32>
    %30 = math.tanh %29 : vector<16x128xf32>
    %cst_21 = arith.constant 1.000000e+00 : f32
    %31 = vector.broadcast %cst_21 : f32 to vector<16x128xf32>
    %32 = arith.addf %31, %30 : vector<16x128xf32>
    %33 = arith.mulf %32, %17 : vector<16x128xf32>
    %c0_22 = arith.constant 0 : index
    %c0_23 = arith.constant 0 : index
    %34 = vector.load %arg3[%c0_22, %c0_23] : memref<128x128xf32, #tpu.memory_space<vmem>>, vector<128x128xf32>
    %cst_24 = arith.constant dense<0.000000e+00> : vector<16x128xf32>
    %35 = tpu.matmul %33, %34, %cst_24 {dimension_numbers = #tpu.dot_dimension_numbers<[1], [0], [0], [1], [0, 0, 1, 1], [], []>} : vector<16x128xf32>, vector<128x128xf32>, vector<16x128xf32> -> vector<16x128xf32>
    %cst_25 = arith.constant 5.000000e-01 : f32
    %36 = vector.broadcast %cst_25 : f32 to vector<16x128xf32>
    %37 = arith.mulf %36, %35 : vector<16x128xf32>
    %38 = math.tanh %37 : vector<16x128xf32>
    %cst_26 = arith.constant 1.000000e+00 : f32
    %39 = vector.broadcast %cst_26 : f32 to vector<16x128xf32>
    %40 = arith.addf %39, %38 : vector<16x128xf32>
    %41 = arith.mulf %40, %25 : vector<16x128xf32>
    %c0_27 = arith.constant 0 : index
    %c0_28 = arith.constant 0 : index
    %42 = vector.load %arg5[%c0_27, %c0_28] : memref<16x256xf32, #tpu.memory_space<vmem>>, vector<16x128xf32>
    tpu.vector_store %arg5[%c0_27, %c0_28], %41 {strides = array<i32>} : memref<16x256xf32, #tpu.memory_space<vmem>>, vector<16x128xf32>,
    %c0_29 = arith.constant 0 : index
    %c128 = arith.constant 128 : index
    %43 = vector.load %arg5[%c0_29, %c128] : memref<16x256xf32, #tpu.memory_space<vmem>>, vector<16x128xf32>
    tpu.vector_store %arg5[%c0_29, %c128], %33 {strides = array<i32>} : memref<16x256xf32, #tpu.memory_space<vmem>>, vector<16x128xf32>,
    return
  }
  func.func @transform_0(%arg0: i32) -> (i32, i32) {
    %c0_i32 = arith.constant 0 : i32
    %c0_i32_0 = arith.constant 0 : i32
    return %arg0, %c0_i32 : i32, i32
  }
  func.func @transform_1(%arg0: i32) -> (i32, i32) {
    %c0_i32 = arith.constant 0 : i32
    %c0_i32_0 = arith.constant 0 : i32
    return %arg0, %c0_i32 : i32, i32
  }
  func.func @transform_2(%arg0: i32) -> (i32, i32) {
    %c0_i32 = arith.constant 0 : i32
    %c0_i32_0 = arith.constant 0 : i32
    %c0_i32_1 = arith.constant 0 : i32
    return %c0_i32, %c0_i32_0 : i32, i32
  }
  func.func @transform_3(%arg0: i32) -> (i32, i32) {
    %c0_i32 = arith.constant 0 : i32
    %c0_i32_0 = arith.constant 0 : i32
    %c0_i32_1 = arith.constant 0 : i32
    return %c0_i32, %c0_i32_0 : i32, i32
  }
  func.func @transform_4(%arg0: i32) -> (i32, i32) {
    %c0_i32 = arith.constant 0 : i32
    %c0_i32_0 = arith.constant 0 : i32
    return %arg0, %c0_i32 : i32, i32
  }
}

module attributes {stable_mosaic.version = 11 : i64} {
  func.func @mogrify_kernel(%arg0: i32, %arg1: memref<16x128xf32, #tpu.memory_space<vmem>>, %arg2: memref<16x128xf32, #tpu.memory_space<vmem>>, %arg3: memref<128x128xf32, #tpu.memory_space<vmem>>, %arg4: memref<128x128xf32, #tpu.memory_space<vmem>>, %arg5: memref<16x256xf32, #tpu.memory_space<vmem>>) attributes {dimension_semantics = [#tpu.dimension_semantics<parallel>], iteration_bounds = array<i64: 1>, scalar_prefetch = 0 : i64, scratch_operands = 0 : i64, tpu.core_type = #tpu.core_type<tc>, window_params = [{transform_indices = @transform_0, window_bounds = array<i64: 16, 128>}, {transform_indices = @transform_1, window_bounds = array<i64: 16, 128>}, {pipeline_mode = #tpu.pipeline_mode<synchronous>, transform_indices = @transform_2, window_bounds = array<i64: 128, 128>}, {pipeline_mode = #tpu.pipeline_mode<synchronous>, transform_indices = @transform_3, window_bounds = array<i64: 128, 128>}, {transform_indices = @transform_4, window_bounds = array<i64: 16, 256>}]} {
    %c0 = arith.constant 0 : index
    %c0_0 = arith.constant 0 : index
    %0 = vector.load %arg1[%c0, %c0_0] : memref<16x128xf32, #tpu.memory_space<vmem>>, vector<16x128xf32>
    %c0_1 = arith.constant 0 : index
    %c0_2 = arith.constant 0 : index
    %1 = vector.load %arg2[%c0_1, %c0_2] : memref<16x128xf32, #tpu.memory_space<vmem>>, vector<16x128xf32>
    %c0_3 = arith.constant 0 : index
    %c0_4 = arith.constant 0 : index
    %2 = vector.load %arg3[%c0_3, %c0_4] : memref<128x128xf32, #tpu.memory_space<vmem>>, vector<128x128xf32>
    %cst = arith.constant dense<0.000000e+00> : vector<16x128xf32>
    %3 = tpu.matmul %1, %2, %cst {dimension_numbers = #tpu.dot_dimension_numbers<[1], [0], [0], [1], [0, 0, 1, 1], [], []>} : vector<16x128xf32>, vector<128x128xf32>, vector<16x128xf32> -> vector<16x128xf32>
    %cst_5 = arith.constant 5.000000e-01 : f32
    %4 = vector.broadcast %cst_5 : f32 to vector<16x128xf32>
    %5 = arith.mulf %4, %3 : vector<16x128xf32>
    %6 = math.tanh %5 : vector<16x128xf32>
    %cst_6 = arith.constant 1.000000e+00 : f32
    %7 = vector.broadcast %cst_6 : f32 to vector<16x128xf32>
    %8 = arith.addf %7, %6 : vector<16x128xf32>
    %9 = arith.mulf %8, %0 : vector<16x128xf32>
    %c0_7 = arith.constant 0 : index
    %c0_8 = arith.constant 0 : index
    %10 = vector.load %arg4[%c0_7, %c0_8] : memref<128x128xf32, #tpu.memory_space<vmem>>, vector<128x128xf32>
    %cst_9 = arith.constant dense<0.000000e+00> : vector<16x128xf32>
    %11 = tpu.matmul %9, %10, %cst_9 {dimension_numbers = #tpu.dot_dimension_numbers<[1], [0], [0], [1], [0, 0, 1, 1], [], []>} : vector<16x128xf32>, vector<128x128xf32>, vector<16x128xf32> -> vector<16x128xf32>
    %cst_10 = arith.constant 5.000000e-01 : f32
    %12 = vector.broadcast %cst_10 : f32 to vector<16x128xf32>
    %13 = arith.mulf %12, %11 : vector<16x128xf32>
    %14 = math.tanh %13 : vector<16x128xf32>
    %cst_11 = arith.constant 1.000000e+00 : f32
    %15 = vector.broadcast %cst_11 : f32 to vector<16x128xf32>
    %16 = arith.addf %15, %14 : vector<16x128xf32>
    %17 = arith.mulf %16, %1 : vector<16x128xf32>
    %c0_12 = arith.constant 0 : index
    %c0_13 = arith.constant 0 : index
    %18 = vector.load %arg3[%c0_12, %c0_13] : memref<128x128xf32, #tpu.memory_space<vmem>>, vector<128x128xf32>
    %cst_14 = arith.constant dense<0.000000e+00> : vector<16x128xf32>
    %19 = tpu.matmul %17, %18, %cst_14 {dimension_numbers = #tpu.dot_dimension_numbers<[1], [0], [0], [1], [0, 0, 1, 1], [], []>} : vector<16x128xf32>, vector<128x128xf32>, vector<16x128xf32> -> vector<16x128xf32>
    %cst_15 = arith.constant 5.000000e-01 : f32
    %20 = vector.broadcast %cst_15 : f32 to vector<16x128xf32>
    %21 = arith.mulf %20, %19 : vector<16x128xf32>
    %22 = math.tanh %21 : vector<16x128xf32>
    %cst_16 = arith.constant 1.000000e+00 : f32
    %23 = vector.broadcast %cst_16 : f32 to vector<16x128xf32>
    %24 = arith.addf %23, %22 : vector<16x128xf32>
    %25 = arith.mulf %24, %9 : vector<16x128xf32>
    %c0_17 = arith.constant 0 : index
    %c0_18 = arith.constant 0 : index
    %26 = vector.load %arg4[%c0_17, %c0_18] : memref<128x128xf32, #tpu.memory_space<vmem>>, vector<128x128xf32>
    %cst_19 = arith.constant dense<0.000000e+00> : vector<16x128xf32>
    %27 = tpu.matmul %25, %26, %cst_19 {dimension_numbers = #tpu.dot_dimension_numbers<[1], [0], [0], [1], [0, 0, 1, 1], [], []>} : vector<16x128xf32>, vector<128x128xf32>, vector<16x128xf32> -> vector<16x128xf32>
    %cst_20 = arith.constant 5.000000e-01 : f32
    %28 = vector.broadcast %cst_20 : f32 to vector<16x128xf32>
    %29 = arith.mulf %28, %27 : vector<16x128xf32>
    %30 = math.tanh %29 : vector<16x128xf32>
    %cst_21 = arith.constant 1.000000e+00 : f32
    %31 = vector.broadcast %cst_21 : f32 to vector<16x128xf32>
    %32 = arith.addf %31, %30 : vector<16x128xf32>
    %33 = arith.mulf %32, %17 : vector<16x128xf32>
    %c0_22 = arith.constant 0 : index
    %c0_23 = arith.constant 0 : index
    %34 = vector.load %arg3[%c0_22, %c0_23] : memref<128x128xf32, #tpu.memory_space<vmem>>, vector<128x128xf32>
    %cst_24 = arith.constant dense<0.000000e+00> : vector<16x128xf32>
    %35 = tpu.matmul %33, %34, %cst_24 {dimension_numbers = #tpu.dot_dimension_numbers<[1], [0], [0], [1], [0, 0, 1, 1], [], []>} : vector<16x128xf32>, vector<128x128xf32>, vector<16x128xf32> -> vector<16x128xf32>
    %cst_25 = arith.constant 5.000000e-01 : f32
    %36 = vector.broadcast %cst_25 : f32 to vector<16x128xf32>
    %37 = arith.mulf %36, %35 : vector<16x128xf32>
    %38 = math.tanh %37 : vector<16x128xf32>
    %cst_26 = arith.constant 1.000000e+00 : f32
    %39 = vector.broadcast %cst_26 : f32 to vector<16x128xf32>
    %40 = arith.addf %39, %38 : vector<16x128xf32>
    %41 = arith.mulf %40, %25 : vector<16x128xf32>
    %c0_27 = arith.constant 0 : index
    %c0_28 = arith.constant 0 : index
    %42 = vector.load %arg5[%c0_27, %c0_28] : memref<16x256xf32, #tpu.memory_space<vmem>>, vector<16x128xf32>
    tpu.vector_store %arg5[%c0_27, %c0_28], %41 {strides = array<i32>} : memref<16x256xf32, #tpu.memory_space<vmem>>, vector<16x128xf32>,
    %c0_29 = arith.constant 0 : index
    %c128 = arith.constant 128 : index
    %43 = vector.load %arg5[%c0_29, %c128] : memref<16x256xf32, #tpu.memory_space<vmem>>, vector<16x128xf32>
    tpu.vector_store %arg5[%c0_29, %c128], %33 {strides = array<i32>} : memref<16x256xf32, #tpu.memory_space<vmem>>, vector<16x128xf32>,
    return
  }
  func.func @transform_0(%arg0: i32) -> (i32, i32) {
    %c0_i32 = arith.constant 0 : i32
    %c0_i32_0 = arith.constant 0 : i32
    return %arg0, %c0_i32 : i32, i32
  }
  func.func @transform_1(%arg0: i32) -> (i32, i32) {
    %c0_i32 = arith.constant 0 : i32
    %c0_i32_0 = arith.constant 0 : i32
    return %arg0, %c0_i32 : i32, i32
  }
  func.func @transform_2(%arg0: i32) -> (i32, i32) {
    %c0_i32 = arith.constant 0 : i32
    %c0_i32_0 = arith.constant 0 : i32
    %c0_i32_1 = arith.constant 0 : i32
    return %c0_i32, %c0_i32_0 : i32, i32
  }
  func.func @transform_3(%arg0: i32) -> (i32, i32) {
    %c0_i32 = arith.constant 0 : i32
    %c0_i32_0 = arith.constant 0 : i32
    %c0_i32_1 = arith.constant 0 : i32
    return %c0_i32, %c0_i32_0 : i32, i32
  }
  func.func @transform_4(%arg0: i32) -> (i32, i32) {
    %c0_i32 = arith.constant 0 : i32
    %c0_i32_0 = arith.constant 0 : i32
    return %arg0, %c0_i32 : i32, i32
  }
}

module attributes {stable_mosaic.version = 11 : i64} {
  func.func @gate_kernel(%arg0: i32, %arg1: i32, %arg2: i32, %arg3: memref<16x256xf32, #tpu.memory_space<vmem>>, %arg4: memref<256x512xf32, #tpu.memory_space<vmem>>, %arg5: memref<1x512xf32, #tpu.memory_space<vmem>>, %arg6: memref<16x128xf32, #tpu.memory_space<vmem>>, %arg7: memref<16x128xf32, #tpu.memory_space<vmem>>, %arg8: memref<16x128xf32, #tpu.memory_space<vmem>>, %arg9: memref<16x512xf32, #tpu.memory_space<vmem>>) attributes {dimension_semantics = [#tpu.dimension_semantics<parallel>, #tpu.dimension_semantics<parallel>, #tpu.dimension_semantics<arbitrary>], iteration_bounds = array<i64: 1, 1, 1>, scalar_prefetch = 0 : i64, scratch_operands = 1 : i64, tpu.core_type = #tpu.core_type<tc>, window_params = [{transform_indices = @transform_0, window_bounds = array<i64: 16, 256>}, {transform_indices = @transform_1, window_bounds = array<i64: 256, 512>}, {transform_indices = @transform_2, window_bounds = array<i64: 1, 512>}, {transform_indices = @transform_3, window_bounds = array<i64: 16, 128>}, {transform_indices = @transform_4, window_bounds = array<i64: 16, 128>}, {transform_indices = @transform_5, window_bounds = array<i64: 16, 128>}]} {
    %c0_i32 = arith.constant 0 : i32
    %0 = arith.cmpi eq, %arg2, %c0_i32 : i32
    %1 = arith.extui %0 : i1 to i32
    %c0_i32_0 = arith.constant 0 : i32
    %2 = arith.cmpi ne, %1, %c0_i32_0 : i32
    scf.if %2 {
      %cst_10 = arith.constant 0.000000e+00 : f32
      %12 = vector.broadcast %cst_10 : f32 to vector<16x512xf32>
      %c0_11 = arith.constant 0 : index
      %c0_12 = arith.constant 0 : index
      %13 = vector.load %arg9[%c0_11, %c0_12] : memref<16x512xf32, #tpu.memory_space<vmem>>, vector<16x512xf32>
      tpu.vector_store %arg9[%c0_11, %c0_12], %12 {strides = array<i32>} : memref<16x512xf32, #tpu.memory_space<vmem>>, vector<16x512xf32>,
    } else {
    }
    %c0 = arith.constant 0 : index
    %c0_1 = arith.constant 0 : index
    %3 = vector.load %arg9[%c0, %c0_1] : memref<16x512xf32, #tpu.memory_space<vmem>>, vector<16x512xf32>
    %c0_2 = arith.constant 0 : index
    %c0_3 = arith.constant 0 : index
    %4 = vector.load %arg3[%c0_2, %c0_3] : memref<16x256xf32, #tpu.memory_space<vmem>>, vector<16x256xf32>
    %c0_4 = arith.constant 0 : index
    %c0_5 = arith.constant 0 : index
    %5 = vector.load %arg4[%c0_4, %c0_5] : memref<256x512xf32, #tpu.memory_space<vmem>>, vector<256x512xf32>
    %cst = arith.constant dense<0.000000e+00> : vector<16x512xf32>
    %6 = tpu.matmul %4, %5, %cst {dimension_numbers = #tpu.dot_dimension_numbers<[1], [0], [0], [1], [0, 0, 1, 1], [], []>} : vector<16x256xf32>, vector<256x512xf32>, vector<16x512xf32> -> vector<16x512xf32>
    %7 = arith.addf %3, %6 : vector<16x512xf32>
    %c0_6 = arith.constant 0 : index
    %c0_7 = arith.constant 0 : index
    %8 = vector.load %arg9[%c0_6, %c0_7] : memref<16x512xf32, #tpu.memory_space<vmem>>, vector<16x512xf32>
    tpu.vector_store %arg9[%c0_6, %c0_7], %7 {strides = array<i32>} : memref<16x512xf32, #tpu.memory_space<vmem>>, vector<16x512xf32>,
    %c0_i32_8 = arith.constant 0 : i32
    %9 = arith.cmpi eq, %arg2, %c0_i32_8 : i32
    %10 = arith.extui %9 : i1 to i32
    %c0_i32_9 = arith.constant 0 : i32
    %11 = arith.cmpi ne, %10, %c0_i32_9 : i32
    scf.if %11 {
      %c0_10 = arith.constant 0 : index
      %c0_11 = arith.constant 0 : index
      %12 = vector.load %arg9[%c0_10, %c0_11] : memref<16x512xf32, #tpu.memory_space<vmem>>, vector<16x512xf32>
      %c0_12 = arith.constant 0 : index
      %c0_13 = arith.constant 0 : index
      %13 = vector.load %arg5[%c0_12, %c0_13] : memref<1x512xf32, #tpu.memory_space<vmem>>, vector<1x512xf32>
      %14 = vector.broadcast %13 : vector<1x512xf32> to vector<16x512xf32>
      %15 = arith.addf %12, %14 : vector<16x512xf32>
      %16 = vector.extract_strided_slice %15 {offsets = [0, 0], sizes = [16, 128], strides = [1, 1]} : vector<16x512xf32> to vector<16x128xf32>
      %17 = vector.extract_strided_slice %15 {offsets = [0, 128], sizes = [16, 128], strides = [1, 1]} : vector<16x512xf32> to vector<16x128xf32>
      %18 = vector.extract_strided_slice %15 {offsets = [0, 256], sizes = [16, 128], strides = [1, 1]} : vector<16x512xf32> to vector<16x128xf32>
      %19 = vector.extract_strided_slice %15 {offsets = [0, 384], sizes = [16, 128], strides = [1, 1]} : vector<16x512xf32> to vector<16x128xf32>
      %c0_14 = arith.constant 0 : index
      %c0_15 = arith.constant 0 : index
      %20 = vector.load %arg6[%c0_14, %c0_15] : memref<16x128xf32, #tpu.memory_space<vmem>>, vector<16x128xf32>
      %21 = arith.negf %17 : vector<16x128xf32>
      %22 = math.exp %21 : vector<16x128xf32>
      %cst_16 = arith.constant 1.000000e+00 : f32
      %23 = vector.broadcast %cst_16 : f32 to vector<16x128xf32>
      %24 = arith.addf %23, %22 : vector<16x128xf32>
      %25 = arith.divf %23, %24 : vector<16x128xf32>
      %26 = arith.mulf %25, %20 : vector<16x128xf32>
      %27 = arith.negf %16 : vector<16x128xf32>
      %28 = math.exp %27 : vector<16x128xf32>
      %cst_17 = arith.constant 1.000000e+00 : f32
      %29 = vector.broadcast %cst_17 : f32 to vector<16x128xf32>
      %30 = arith.addf %29, %28 : vector<16x128xf32>
      %31 = arith.divf %29, %30 : vector<16x128xf32>
      %32 = math.tanh %18 : vector<16x128xf32>
      %33 = arith.mulf %31, %32 : vector<16x128xf32>
      %34 = arith.addf %26, %33 : vector<16x128xf32>
      %35 = arith.negf %19 : vector<16x128xf32>
      %36 = math.exp %35 : vector<16x128xf32>
      %cst_18 = arith.constant 1.000000e+00 : f32
      %37 = vector.broadcast %cst_18 : f32 to vector<16x128xf32>
      %38 = arith.addf %37, %36 : vector<16x128xf32>
      %39 = arith.divf %37, %38 : vector<16x128xf32>
      %40 = math.tanh %34 : vector<16x128xf32>
      %41 = arith.mulf %39, %40 : vector<16x128xf32>
      %c0_19 = arith.constant 0 : index
      %c0_20 = arith.constant 0 : index
      %42 = vector.load %arg7[%c0_19, %c0_20] : memref<16x128xf32, #tpu.memory_space<vmem>>, vector<16x128xf32>
      tpu.vector_store %arg7[%c0_19, %c0_20], %41 {strides = array<i32>} : memref<16x128xf32, #tpu.memory_space<vmem>>, vector<16x128xf32>,
      %c0_21 = arith.constant 0 : index
      %c0_22 = arith.constant 0 : index
      %43 = vector.load %arg8[%c0_21, %c0_22] : memref<16x128xf32, #tpu.memory_space<vmem>>, vector<16x128xf32>
      tpu.vector_store %arg8[%c0_21, %c0_22], %34 {strides = array<i32>} : memref<16x128xf32, #tpu.memory_space<vmem>>, vector<16x128xf32>,
    } else {
    }
    return
  }
  func.func @transform_0(%arg0: i32, %arg1: i32, %arg2: i32) -> (i32, i32) {
    %c0_i32 = arith.constant 0 : i32
    return %arg0, %arg2 : i32, i32
  }
  func.func @transform_1(%arg0: i32, %arg1: i32, %arg2: i32) -> (i32, i32) {
    %c0_i32 = arith.constant 0 : i32
    return %arg2, %arg1 : i32, i32
  }
  func.func @transform_2(%arg0: i32, %arg1: i32, %arg2: i32) -> (i32, i32) {
    %c0_i32 = arith.constant 0 : i32
    %c0_i32_0 = arith.constant 0 : i32
    return %c0_i32, %arg1 : i32, i32
  }
  func.func @transform_3(%arg0: i32, %arg1: i32, %arg2: i32) -> (i32, i32) {
    %c0_i32 = arith.constant 0 : i32
    return %arg0, %arg1 : i32, i32
  }
  func.func @transform_4(%arg0: i32, %arg1: i32, %arg2: i32) -> (i32, i32) {
    %c0_i32 = arith.constant 0 : i32
    return %arg0, %arg1 : i32, i32
  }
  func.func @transform_5(%arg0: i32, %arg1: i32, %arg2: i32) -> (i32, i32) {
    %c0_i32 = arith.constant 0 : i32
    return %arg0, %arg1 : i32, i32
  }
}

</mosaic_0001>

<bundles_post_ra>
// kernel: mog_lstm_cell.2
= control target key start
LH: loop header
LB: loop body
LE: loop exit
PB: predicated region body
PF: predicated region fallthrough
CT: control target
= control target key end

     0   :  { %s501_s2 = inlined_call_operand.vmem [shape: f32[128,128], index: 2, kind: input, shape index: {}]   ;;  %s502_s3 = inlined_call_operand.vmem [shape: f32[128,128], index: 3, kind: input, shape index: {}]   ;;  %s503_s1 = inlined_call_operand.vmem [shape: f32[16,128], index: 1, kind: input, shape index: {}]   ;;  %s504_s0 = inlined_call_operand.vmem [shape: f32[16,128], index: 0, kind: input, shape index: {}]   ;;  %s505_s4 = inlined_call_operand.vmem [shape: f32[16,256], index: 4, kind: output, shape index: {}]  }
   0x1   :  { %v280_v0 = vld [vmem:[%s501_s2 + $0x78] sm:$0xff]  ;;  %v285_v1 = vld [vmem:[%s501_s2 + $0x70] sm:$0xff]  ;;  %v292_v2 = vld [vmem:[%s501_s2 + $0x68] sm:$0xff] }
   0x2   :  { %37 = vmatpush.msra.mxu0 %v280_v0  ;;  %115 = vmatpush.msra.mxu2 %v280_v0  ;;  %v299_v3 = vld [vmem:[%s501_s2 + $0x60] sm:$0xff]  ;;  %v306_v4 = vld [vmem:[%s501_s2 + $0x58] sm:$0xff]  ;;  %v313_v5 = vld [vmem:[%s501_s2 + $0x50] sm:$0xff] }
   0x3   :  { %v83_v6 = vld [vmem:[%s502_s3 + $0x78] sm:$0xff]  ;;  %v82_v7 = vld [vmem:[%s502_s3 + $0x70] sm:$0xff]  ;;  %v325_v8 = vld [vmem:[%s501_s2 + $0x48] sm:$0xff] }
   0x4   :  { %38 = vmatpush.msra.mxu0 %v285_v1  ;;  %116 = vmatpush.msra.mxu2 %v285_v1  ;;  %v81_v9 = vld [vmem:[%s502_s3 + $0x68] sm:$0xff]  ;;  %v335_v10 = vld [vmem:[%s501_s2 + $0x40] sm:$0xff]  ;;  %v345_v12 = vld [vmem:[%s501_s2 + $0x38] sm:$0xff] }
   0x5   :  { %84 = vmatpush.msra.mxu1 %v83_v6  ;;  %146 = vmatpush.msra.mxu3 %v83_v6  ;;  %v80_v11 = vld [vmem:[%s502_s3 + $0x60] sm:$0xff]  ;;  %v79_v13 = vld [vmem:[%s502_s3 + $0x58] sm:$0xff]  ;;  %v355_v14 = vld [vmem:[%s501_s2 + $0x30] sm:$0xff] }
   0x6   :  { %39 = vmatpush.msra.mxu0 %v292_v2  ;;  %117 = vmatpush.msra.mxu2 %v292_v2  ;;  %v78_v15 = vld [vmem:[%s502_s3 + $0x50] sm:$0xff]  ;;  %v365_v16 = vld [vmem:[%s501_s2 + $0x28] sm:$0xff]  ;;  %v375_v18 = vld [vmem:[%s501_s2 + $0x20] sm:$0xff] }
   0x7   :  { %85 = vmatpush.msra.mxu1 %v82_v7  ;;  %147 = vmatpush.msra.mxu3 %v82_v7  ;;  %v77_v17 = vld [vmem:[%s502_s3 + $0x48] sm:$0xff]  ;;  %v76_v19 = vld [vmem:[%s502_s3 + $0x40] sm:$0xff]  ;;  %v385_v20 = vld [vmem:[%s501_s2 + $0x18] sm:$0xff] }
   0x8   :  { %40 = vmatpush.msra.mxu0 %v299_v3  ;;  %118 = vmatpush.msra.mxu2 %v299_v3  ;;  %v75_v21 = vld [vmem:[%s502_s3 + $0x38] sm:$0xff]  ;;  %v395_v22 = vld [vmem:[%s501_s2 + $0x10] sm:$0xff]  ;;  %v402_v23 = vld [vmem:[%s501_s2 + $0x8] sm:$0xff] }
   0x9   :  { %86 = vmatpush.msra.mxu1 %v81_v9  ;;  %148 = vmatpush.msra.mxu3 %v81_v9  ;;  %v409_v24 = vld [vmem:[%s501_s2] sm:$0xff]  ;;  %v427_v26 = vld [vmem:[%s503_s1 + $0x8] sm:$0xff]  ;;  %v74_v27 = vld [vmem:[%s502_s3 + $0x30] sm:$0xff] }
   0xa   :  { %41 = vmatpush.msra.mxu0 %v306_v4  ;;  %119 = vmatpush.msra.mxu2 %v306_v4  ;;  %v416_v25 = vld [vmem:[%s503_s1] sm:$0xff]  ;;  %v73_v28 = vld [vmem:[%s502_s3 + $0x28] sm:$0xff]  ;;  %v71_v30 = vld [vmem:[%s502_s3 + $0x18] sm:$0xff] }
   0xb   :  { %87 = vmatpush.msra.mxu1 %v80_v11  ;;  %149 = vmatpush.msra.mxu3 %v80_v11  ;;  %v72_v29 = vld [vmem:[%s502_s3 + $0x20] sm:$0xff]  ;;  %v70_v31 = vld [vmem:[%s502_s3 + $0x10] sm:$0xff]  ;;  %v69_v32 = vld [vmem:[%s502_s3 + $0x8] sm:$0xff] }
   0xc   :  { %42 = vmatpush.msra.mxu0 %v313_v5  ;;  %120 = vmatpush.msra.mxu2 %v313_v5  ;;  %v68_v33 = vld [vmem:[%s502_s3] sm:$0xff]  ;;  %v18_v43 = vld [vmem:[%s504_s0 + $0x8] sm:$0xff] }
   0xd   :  { %88 = vmatpush.msra.mxu1 %v79_v13  ;;  %150 = vmatpush.msra.mxu3 %v79_v13  ;;  %v17_v39 = vld [vmem:[%s504_s0] sm:$0xff] }
   0xe   :  { %43 = vmatpush.msra.mxu0 %v325_v8  ;;  %121 = vmatpush.msra.mxu2 %v325_v8 }
   0xf   :  { %89 = vmatpush.msra.mxu1 %v78_v15  ;;  %151 = vmatpush.msra.mxu3 %v78_v15 }
  0x10   :  { %44 = vmatpush.msra.mxu0 %v335_v10  ;;  %122 = vmatpush.msra.mxu2 %v335_v10 }
  0x11   :  { %90 = vmatpush.msra.mxu1 %v77_v17  ;;  %152 = vmatpush.msra.mxu3 %v77_v17 }
  0x12   :  { %45 = vmatpush.msra.mxu0 %v345_v12  ;;  %123 = vmatpush.msra.mxu2 %v345_v12 }
  0x13   :  { %91 = vmatpush.msra.mxu1 %v76_v19  ;;  %153 = vmatpush.msra.mxu3 %v76_v19 }
  0x14   :  { %46 = vmatpush.msra.mxu0 %v355_v14  ;;  %124 = vmatpush.msra.mxu2 %v355_v14 }
  0x15   :  { %92 = vmatpush.msra.mxu1 %v75_v21  ;;  %154 = vmatpush.msra.mxu3 %v75_v21 }
  0x16   :  { %47 = vmatpush.msra.mxu0 %v365_v16  ;;  %125 = vmatpush.msra.mxu2 %v365_v16 }
  0x17   :  { %93 = vmatpush.msra.mxu1 %v74_v27  ;;  %155 = vmatpush.msra.mxu3 %v74_v27 }
  0x18   :  { %48 = vmatpush.msra.mxu0 %v375_v18  ;;  %126 = vmatpush.msra.mxu2 %v375_v18 }
  0x19   :  { %94 = vmatpush.msra.mxu1 %v73_v28  ;;  %156 = vmatpush.msra.mxu3 %v73_v28 }
  0x1a   :  { %49 = vmatpush.msra.mxu0 %v385_v20  ;;  %127 = vmatpush.msra.mxu2 %v385_v20 }
  0x1b   :  { %95 = vmatpush.msra.mxu1 %v72_v29  ;;  %157 = vmatpush.msra.mxu3 %v72_v29 }
  0x1c   :  { %50 = vmatpush.msra.mxu0 %v395_v22  ;;  %128 = vmatpush.msra.mxu2 %v395_v22 }
  0x1d   :  { %96 = vmatpush.msra.mxu1 %v71_v30  ;;  %158 = vmatpush.msra.mxu3 %v71_v30 }
  0x1e   :  { %51 = vmatpush.msra.mxu0 %v402_v23  ;;  %129 = vmatpush.msra.mxu2 %v402_v23 }
  0x1f   :  { %97 = vmatpush.msra.mxu1 %v70_v31  ;;  %159 = vmatpush.msra.mxu3 %v70_v31 }
  0x20   :  { %52 = vmatpush.msra.mxu0 %v409_v24  ;;  %130 = vmatpush.msra.mxu2 %v409_v24 }
  0x21   :  { %53 = vmatmul.f32.vlgmr.msra.gmra.mxu0 %v416_v25  ;;  %98 = vmatpush.msra.mxu1 %v69_v32 }
  0x22   :  { %177 = vmatpush.msrb.mxu0 %v280_v0  ;;  %160 = vmatpush.msra.mxu3 %v69_v32 }
  0x23   :  { %99 = vmatpush.msra.mxu1 %v68_v33 }
  0x24   :  { %178 = vmatpush.msrb.mxu0 %v285_v1  ;;  %161 = vmatpush.msra.mxu3 %v68_v33 }
  0x25   :  { %216 = vmatpush.msrb.mxu1 %v280_v0 }
  0x26   :  { %179 = vmatpush.msrb.mxu0 %v292_v2 }
  0x27   :  { %217 = vmatpush.msrb.mxu1 %v285_v1 }
  0x28   :  { %180 = vmatpush.msrb.mxu0 %v299_v3 }
  0x29   :  { %56 = vmatmul.f32.gmra.mxu0 %v427_v26  ;;  %218 = vmatpush.msrb.mxu1 %v292_v2 }
  0x2a   :  { %181 = vmatpush.msrb.mxu0 %v306_v4 }
  0x2b   :  { %219 = vmatpush.msrb.mxu1 %v299_v3 }
  0x2c   :  { %182 = vmatpush.msrb.mxu0 %v313_v5 }
  0x2d   :  { %220 = vmatpush.msrb.mxu1 %v306_v4 }
  0x2e   :  { %183 = vmatpush.msrb.mxu0 %v325_v8 }
  0x2f   :  { %221 = vmatpush.msrb.mxu1 %v313_v5 }
  0x30   :  { %184 = vmatpush.msrb.mxu0 %v335_v10 }
  0x31   :  { %222 = vmatpush.msrb.mxu1 %v325_v8 }
  0x32   :  { %185 = vmatpush.msrb.mxu0 %v345_v12 }
  0x33   :  { %223 = vmatpush.msrb.mxu1 %v335_v10 }
  0x34   :  { %186 = vmatpush.msrb.mxu0 %v355_v14 }
  0x35   :  { %224 = vmatpush.msrb.mxu1 %v345_v12 }
  0x36   :  { %187 = vmatpush.msrb.mxu0 %v365_v16 }
  0x37   :  { %225 = vmatpush.msrb.mxu1 %v355_v14 }
  0x38   :  { %188 = vmatpush.msrb.mxu0 %v375_v18 }
  0x39   :  { %226 = vmatpush.msrb.mxu1 %v365_v16 }
  0x3a   :  { %189 = vmatpush.msrb.mxu0 %v385_v20 }
  0x3b   :  { %227 = vmatpush.msrb.mxu1 %v375_v18 }
  0x3c   :  { %190 = vmatpush.msrb.mxu0 %v395_v22 }
  0x3d   :  { %228 = vmatpush.msrb.mxu1 %v385_v20 }
  0x3e   :  { %191 = vmatpush.msrb.mxu0 %v402_v23 }
  0x3f   :  { %229 = vmatpush.msrb.mxu1 %v395_v22 }
  0x40   :  { %192 = vmatpush.msrb.mxu0 %v409_v24 }
  0x41   :  { %230 = vmatpush.msrb.mxu1 %v402_v23 }
  0x43   :  { %231 = vmatpush.msrb.mxu1 %v409_v24 }
  0x9e   :  { %v54_v34 = vpop.f32.mrf.mxu0 }
  0x9f   :  { %v60_v35 = vmul.f32 0.5, %v54_v34 }
  0xa1   :  { %232 = vtanh.f32 %v60_v35 }
  0xa6   :  { %v57_v36 = vpop.f32.mrf.mxu0 }
  0xa7   :  { %v233_v37 = vpop.eup %232  ;;  %v61_v38 = vmul.f32 0.5, %v57_v36 }
  0xa8   :  { %v64_v40 = vadd.f32 1.0, %v233_v37 }
  0xa9   :  { %234 = vtanh.f32 %v61_v38 }
  0xaa   :  { %v66_v41 = vmul.f32 %v64_v40, %v17_v39 }
  0xac   :  { %100 = vmatmul.f32.vlgmr.msra.gmra.mxu1 %v66_v41 }
  0xaf   :  { %v235_v42 = vpop.eup %234 }
  0xb0   :  { %v65_v44 = vadd.f32 1.0, %v235_v42 }
  0xb2   :  { %v67_v45 = vmul.f32 %v65_v44, %v18_v43 }
  0xb4   :  { %103 = vmatmul.f32.gmra.mxu1 %v67_v45 }
 0x129   :  { %v101_v46 = vpop.f32.mrf.mxu1 }
 0x12a   :  { %v107_v47 = vmul.f32 0.5, %v101_v46 }
 0x12c   :  { %236 = vtanh.f32 %v107_v47 }
 0x131   :  { %v104_v48 = vpop.f32.mrf.mxu1 }
 0x132   :  { %v237_v49 = vpop.eup %236  ;;  %v108_v50 = vmul.f32 0.5, %v104_v48 }
 0x133   :  { %v111_v51 = vadd.f32 1.0, %v237_v49 }
 0x134   :  { %238 = vtanh.f32 %v108_v50 }
 0x135   :  { %v113_v52 = vmul.f32 %v111_v51, %v416_v25 }
 0x137   :  { %131 = vmatmul.f32.vlgmr.msra.gmra.mxu2 %v113_v52 }
 0x13a   :  { %v239_v53 = vpop.eup %238 }
 0x13b   :  { %v112_v54 = vadd.f32 1.0, %v239_v53 }
 0x13d   :  { %v114_v55 = vmul.f32 %v112_v54, %v427_v26 }
 0x13f   :  { %134 = vmatmul.f32.gmra.mxu2 %v114_v55 }
 0x1ba   :  { %v132_v56 = vpop.f32.mrf.mxu2 }
 0x1bb   :  { %v138_v57 = vmul.f32 0.5, %v132_v56 }
 0x1bd   :  { %240 = vtanh.f32 %v138_v57 }
 0x1c2   :  { %v135_v58 = vpop.f32.mrf.mxu2 }
 0x1c3   :  { %v241_v59 = vpop.eup %240  ;;  %v139_v60 = vmul.f32 0.5, %v135_v58 }
 0x1c4   :  { %v142_v61 = vadd.f32 1.0, %v241_v59 }
 0x1c5   :  { %242 = vtanh.f32 %v139_v60 }
 0x1c6   :  { %v144_v62 = vmul.f32 %v142_v61, %v66_v41 }
 0x1c8   :  { %162 = vmatmul.f32.vlgmr.msra.gmra.mxu3 %v144_v62 }
 0x1cb   :  { %v243_v63 = vpop.eup %242 }
 0x1cc   :  { %v143_v0 = vadd.f32 1.0, %v243_v63 }
 0x1ce   :  { %v145_v1 = vmul.f32 %v143_v0, %v67_v45 }
 0x1d0   :  { %165 = vmatmul.f32.gmra.mxu3 %v145_v1 }
 0x24b   :  { %v163_v2 = vpop.f32.mrf.mxu3 }
 0x24c   :  { %v169_v3 = vmul.f32 0.5, %v163_v2 }
 0x24e   :  { %244 = vtanh.f32 %v169_v3 }
 0x253   :  { %v166_v4 = vpop.f32.mrf.mxu3 }
 0x254   :  { %v245_v5 = vpop.eup %244  ;;  %v170_v6 = vmul.f32 0.5, %v166_v4 }
 0x255   :  { %v173_v7 = vadd.f32 1.0, %v245_v5 }
 0x256   :  { %246 = vtanh.f32 %v170_v6 }
 0x257   :  { %v175_v8 = vmul.f32 %v173_v7, %v113_v52 }
 0x259   :  { %193 = vmatmul.f32.vlgmr.msrb.gmra.mxu0 %v175_v8  ;;  %210 = vst [vmem:[%s505_s4 + $0x8] sm:$0xff] %v175_v8 }
 0x25c   :  { %v247_v9 = vpop.eup %246 }
 0x25d   :  { %v174_v10 = vadd.f32 1.0, %v247_v9 }
 0x25f   :  { %v176_v11 = vmul.f32 %v174_v10, %v114_v55 }
 0x261   :  { %196 = vmatmul.f32.vlgmr.msrb.gmra.mxu1 %v176_v11  ;;  %211 = vst [vmem:[%s505_s4 + $0x18] sm:$0xff] %v176_v11 }
 0x2d6   :  { %v194_v12 = vpop.f32.mrf.mxu0 }
 0x2d7   :  { %v200_v13 = vmul.f32 0.5, %v194_v12 }
 0x2d9   :  { %248 = vtanh.f32 %v200_v13 }
 0x2de   :  { %v197_v14 = vpop.f32.mrf.mxu1 }
 0x2df   :  { %v249_v15 = vpop.eup %248  ;;  %v201_v16 = vmul.f32 0.5, %v197_v14 }
 0x2e0   :  { %v204_v17 = vadd.f32 1.0, %v249_v15 }
 0x2e1   :  { %250 = vtanh.f32 %v201_v16 }
 0x2e2   :  { %v206_v18 = vmul.f32 %v204_v17, %v144_v62 }
 0x2e4   :  { %208 = vst [vmem:[%s505_s4] sm:$0xff] %v206_v18 }
 0x2e7   :  { %v251_v19 = vpop.eup %250 }
 0x2e8   :  { %v205_v20 = vadd.f32 1.0, %v251_v19 }
 0x2ea   :  { %v207_v21 = vmul.f32 %v205_v20, %v145_v1 }
 0x2ec   :  { %209 = vst [vmem:[%s505_s4 + $0x10] sm:$0xff] %v207_v21 }

// kernel: mog_lstm_cell.3
= control target key start
LH: loop header
LB: loop body
LE: loop exit
PB: predicated region body
PF: predicated region fallthrough
CT: control target
= control target key end

     0   :  { %s1108_s1 = inlined_call_operand.vmem [shape: f32[256,512], index: 1, kind: input, shape index: {}]   ;;  %s1109_s0 = inlined_call_operand.vmem [shape: f32[16,256], index: 0, kind: input, shape index: {}]   ;;  %s1110_s2 = inlined_call_operand.vmem [shape: f32[1,512], index: 2, kind: input, shape index: {}]   ;;  %s1111_s3 = inlined_call_operand.vmem [shape: f32[16,128], index: 3, kind: input, shape index: {}]   ;;  %s1112_s5 = inlined_call_operand.vmem [shape: f32[16,128], index: 5, kind: output, shape index: {1}]   ;;  %s1113_s4 = inlined_call_operand.vmem [shape: f32[16,128], index: 4, kind: output, shape index: {0}]  }
   0x1   :  { %v103_v0 = vld [vmem:[%s1108_s1 + $0x1e0] sm:$0xff]  ;;  %v104_v2 = vld [vmem:[%s1108_s1 + $0x1e8] sm:$0xff] }
   0x2   :  { %v167_v1 = vld [vmem:[%s1108_s1 + $0x3e0] sm:$0xff]  ;;  %171 = vmatpush.msra.mxu0 %v103_v0  ;;  %v168_v3 = vld [vmem:[%s1108_s1 + $0x3e8] sm:$0xff]  ;;  %217 = vmatpush.msra.mxu2 %v104_v2  ;;  %v105_v0 = vld [vmem:[%s1108_s1 + $0x1f0] sm:$0xff] }
   0x3   :  { %194 = vmatpush.msra.mxu1 %v167_v1  ;;  %v99_v4 = vld [vmem:[%s1108_s1 + $0x1c0] sm:$0xff]  ;;  %240 = vmatpush.msra.mxu3 %v168_v3  ;;  %v100_v6 = vld [vmem:[%s1108_s1 + $0x1c8] sm:$0xff]  ;;  %v169_v1 = vld [vmem:[%s1108_s1 + $0x3f0] sm:$0xff] }
   0x4   :  { %v163_v5 = vld [vmem:[%s1108_s1 + $0x3c0] sm:$0xff]  ;;  %v164_v7 = vld [vmem:[%s1108_s1 + $0x3c8] sm:$0xff]  ;;  %172 = vmatpush.msra.mxu0 %v99_v4  ;;  %218 = vmatpush.msra.mxu2 %v100_v6  ;;  %v106_v2 = vld [vmem:[%s1108_s1 + $0x1f8] sm:$0xff] }
   0x5   :  { %v95_v8 = vld [vmem:[%s1108_s1 + $0x1a0] sm:$0xff]  ;;  %195 = vmatpush.msra.mxu1 %v163_v5  ;;  %v96_v10 = vld [vmem:[%s1108_s1 + $0x1a8] sm:$0xff]  ;;  %241 = vmatpush.msra.mxu3 %v164_v7  ;;  %v170_v3 = vld [vmem:[%s1108_s1 + $0x3f8] sm:$0xff] }
   0x6   :  { %v159_v9 = vld [vmem:[%s1108_s1 + $0x3a0] sm:$0xff]  ;;  %v160_v11 = vld [vmem:[%s1108_s1 + $0x3a8] sm:$0xff]  ;;  %173 = vmatpush.msra.mxu0 %v95_v8  ;;  %219 = vmatpush.msra.mxu2 %v96_v10  ;;  %v101_v6 = vld [vmem:[%s1108_s1 + $0x1d0] sm:$0xff] }
   0x7   :  { %v91_v12 = vld [vmem:[%s1108_s1 + $0x180] sm:$0xff]  ;;  %196 = vmatpush.msra.mxu1 %v159_v9  ;;  %v92_v14 = vld [vmem:[%s1108_s1 + $0x188] sm:$0xff]  ;;  %242 = vmatpush.msra.mxu3 %v160_v11  ;;  %v165_v7 = vld [vmem:[%s1108_s1 + $0x3d0] sm:$0xff] }
   0x8   :  { %v155_v13 = vld [vmem:[%s1108_s1 + $0x380] sm:$0xff]  ;;  %v156_v15 = vld [vmem:[%s1108_s1 + $0x388] sm:$0xff]  ;;  %174 = vmatpush.msra.mxu0 %v91_v12  ;;  %220 = vmatpush.msra.mxu2 %v92_v14  ;;  %v102_v8 = vld [vmem:[%s1108_s1 + $0x1d8] sm:$0xff] }
   0x9   :  { %v87_v16 = vld [vmem:[%s1108_s1 + $0x160] sm:$0xff]  ;;  %197 = vmatpush.msra.mxu1 %v155_v13  ;;  %v88_v18 = vld [vmem:[%s1108_s1 + $0x168] sm:$0xff]  ;;  %243 = vmatpush.msra.mxu3 %v156_v15  ;;  %v166_v9 = vld [vmem:[%s1108_s1 + $0x3d8] sm:$0xff] }
   0xa   :  { %v151_v17 = vld [vmem:[%s1108_s1 + $0x360] sm:$0xff]  ;;  %v152_v19 = vld [vmem:[%s1108_s1 + $0x368] sm:$0xff]  ;;  %175 = vmatpush.msra.mxu0 %v87_v16  ;;  %221 = vmatpush.msra.mxu2 %v88_v18  ;;  %v97_v10 = vld [vmem:[%s1108_s1 + $0x1b0] sm:$0xff] }
   0xb   :  { %v83_v20 = vld [vmem:[%s1108_s1 + $0x140] sm:$0xff]  ;;  %198 = vmatpush.msra.mxu1 %v151_v17  ;;  %v84_v22 = vld [vmem:[%s1108_s1 + $0x148] sm:$0xff]  ;;  %244 = vmatpush.msra.mxu3 %v152_v19  ;;  %v161_v11 = vld [vmem:[%s1108_s1 + $0x3b0] sm:$0xff] }
   0xc   :  { %v147_v21 = vld [vmem:[%s1108_s1 + $0x340] sm:$0xff]  ;;  %v148_v23 = vld [vmem:[%s1108_s1 + $0x348] sm:$0xff]  ;;  %176 = vmatpush.msra.mxu0 %v83_v20  ;;  %222 = vmatpush.msra.mxu2 %v84_v22  ;;  %v98_v12 = vld [vmem:[%s1108_s1 + $0x1b8] sm:$0xff] }
   0xd   :  { %v79_v24 = vld [vmem:[%s1108_s1 + $0x120] sm:$0xff]  ;;  %199 = vmatpush.msra.mxu1 %v147_v21  ;;  %v80_v26 = vld [vmem:[%s1108_s1 + $0x128] sm:$0xff]  ;;  %245 = vmatpush.msra.mxu3 %v148_v23  ;;  %v162_v13 = vld [vmem:[%s1108_s1 + $0x3b8] sm:$0xff] }
   0xe   :  { %v143_v25 = vld [vmem:[%s1108_s1 + $0x320] sm:$0xff]  ;;  %v144_v27 = vld [vmem:[%s1108_s1 + $0x328] sm:$0xff]  ;;  %177 = vmatpush.msra.mxu0 %v79_v24  ;;  %223 = vmatpush.msra.mxu2 %v80_v26  ;;  %v93_v14 = vld [vmem:[%s1108_s1 + $0x190] sm:$0xff] }
   0xf   :  { %v75_v28 = vld [vmem:[%s1108_s1 + $0x100] sm:$0xff]  ;;  %200 = vmatpush.msra.mxu1 %v143_v25  ;;  %v76_v30 = vld [vmem:[%s1108_s1 + $0x108] sm:$0xff]  ;;  %246 = vmatpush.msra.mxu3 %v144_v27  ;;  %v157_v15 = vld [vmem:[%s1108_s1 + $0x390] sm:$0xff] }
  0x10   :  { %v139_v29 = vld [vmem:[%s1108_s1 + $0x300] sm:$0xff]  ;;  %v140_v31 = vld [vmem:[%s1108_s1 + $0x308] sm:$0xff]  ;;  %178 = vmatpush.msra.mxu0 %v75_v28  ;;  %224 = vmatpush.msra.mxu2 %v76_v30  ;;  %v94_v16 = vld [vmem:[%s1108_s1 + $0x198] sm:$0xff] }
  0x11   :  { %v71_v32 = vld [vmem:[%s1108_s1 + $0xe0] sm:$0xff]  ;;  %201 = vmatpush.msra.mxu1 %v139_v29  ;;  %v72_v34 = vld [vmem:[%s1108_s1 + $0xe8] sm:$0xff]  ;;  %247 = vmatpush.msra.mxu3 %v140_v31  ;;  %v158_v17 = vld [vmem:[%s1108_s1 + $0x398] sm:$0xff] }
  0x12   :  { %v135_v33 = vld [vmem:[%s1108_s1 + $0x2e0] sm:$0xff]  ;;  %v136_v35 = vld [vmem:[%s1108_s1 + $0x2e8] sm:$0xff]  ;;  %179 = vmatpush.msra.mxu0 %v71_v32  ;;  %225 = vmatpush.msra.mxu2 %v72_v34  ;;  %v89_v18 = vld [vmem:[%s1108_s1 + $0x170] sm:$0xff] }
  0x13   :  { %v67_v36 = vld [vmem:[%s1108_s1 + $0xc0] sm:$0xff]  ;;  %202 = vmatpush.msra.mxu1 %v135_v33  ;;  %v68_v38 = vld [vmem:[%s1108_s1 + $0xc8] sm:$0xff]  ;;  %248 = vmatpush.msra.mxu3 %v136_v35  ;;  %v153_v19 = vld [vmem:[%s1108_s1 + $0x370] sm:$0xff] }
  0x14   :  { %v131_v37 = vld [vmem:[%s1108_s1 + $0x2c0] sm:$0xff]  ;;  %v132_v39 = vld [vmem:[%s1108_s1 + $0x2c8] sm:$0xff]  ;;  %180 = vmatpush.msra.mxu0 %v67_v36  ;;  %226 = vmatpush.msra.mxu2 %v68_v38  ;;  %v90_v20 = vld [vmem:[%s1108_s1 + $0x178] sm:$0xff] }
  0x15   :  { %v63_v40 = vld [vmem:[%s1108_s1 + $0xa0] sm:$0xff]  ;;  %203 = vmatpush.msra.mxu1 %v131_v37  ;;  %v64_v42 = vld [vmem:[%s1108_s1 + $0xa8] sm:$0xff]  ;;  %249 = vmatpush.msra.mxu3 %v132_v39  ;;  %v154_v21 = vld [vmem:[%s1108_s1 + $0x378] sm:$0xff] }
  0x16   :  { %v127_v41 = vld [vmem:[%s1108_s1 + $0x2a0] sm:$0xff]  ;;  %v128_v43 = vld [vmem:[%s1108_s1 + $0x2a8] sm:$0xff]  ;;  %181 = vmatpush.msra.mxu0 %v63_v40  ;;  %227 = vmatpush.msra.mxu2 %v64_v42  ;;  %v875_v22 = vld [vmem:[%s1109_s0 + $0x10] sm:$0xff] }
  0x17   :  { %v59_v44 = vld [vmem:[%s1108_s1 + $0x80] sm:$0xff]  ;;  %204 = vmatpush.msra.mxu1 %v127_v41  ;;  %v60_v46 = vld [vmem:[%s1108_s1 + $0x88] sm:$0xff]  ;;  %250 = vmatpush.msra.mxu3 %v128_v43  ;;  %v880_v23 = vld [vmem:[%s1109_s0 + $0x18] sm:$0xff] }
  0x18   :  { %v123_v45 = vld [vmem:[%s1108_s1 + $0x280] sm:$0xff]  ;;  %v124_v47 = vld [vmem:[%s1108_s1 + $0x288] sm:$0xff]  ;;  %182 = vmatpush.msra.mxu0 %v59_v44  ;;  %228 = vmatpush.msra.mxu2 %v60_v46  ;;  %v85_v24 = vld [vmem:[%s1108_s1 + $0x150] sm:$0xff] }
  0x19   :  { %v55_v48 = vld [vmem:[%s1108_s1 + $0x60] sm:$0xff]  ;;  %205 = vmatpush.msra.mxu1 %v123_v45  ;;  %v56_v50 = vld [vmem:[%s1108_s1 + $0x68] sm:$0xff]  ;;  %251 = vmatpush.msra.mxu3 %v124_v47  ;;  %v149_v25 = vld [vmem:[%s1108_s1 + $0x350] sm:$0xff] }
  0x1a   :  { %v119_v49 = vld [vmem:[%s1108_s1 + $0x260] sm:$0xff]  ;;  %v120_v51 = vld [vmem:[%s1108_s1 + $0x268] sm:$0xff]  ;;  %183 = vmatpush.msra.mxu0 %v55_v48  ;;  %229 = vmatpush.msra.mxu2 %v56_v50  ;;  %v86_v26 = vld [vmem:[%s1108_s1 + $0x158] sm:$0xff] }
  0x1b   :  { %v51_v52 = vld [vmem:[%s1108_s1 + $0x40] sm:$0xff]  ;;  %206 = vmatpush.msra.mxu1 %v119_v49  ;;  %v52_v54 = vld [vmem:[%s1108_s1 + $0x48] sm:$0xff]  ;;  %252 = vmatpush.msra.mxu3 %v120_v51  ;;  %v150_v27 = vld [vmem:[%s1108_s1 + $0x358] sm:$0xff] }
  0x1c   :  { %v115_v53 = vld [vmem:[%s1108_s1 + $0x240] sm:$0xff]  ;;  %v116_v55 = vld [vmem:[%s1108_s1 + $0x248] sm:$0xff]  ;;  %184 = vmatpush.msra.mxu0 %v51_v52  ;;  %230 = vmatpush.msra.mxu2 %v52_v54  ;;  %v81_v28 = vld [vmem:[%s1108_s1 + $0x130] sm:$0xff] }
  0x1d   :  { %v47_v56 = vld [vmem:[%s1108_s1 + $0x20] sm:$0xff]  ;;  %207 = vmatpush.msra.mxu1 %v115_v53  ;;  %v48_v58 = vld [vmem:[%s1108_s1 + $0x28] sm:$0xff]  ;;  %253 = vmatpush.msra.mxu3 %v116_v55  ;;  %v145_v29 = vld [vmem:[%s1108_s1 + $0x330] sm:$0xff] }
  0x1e   :  { %v111_v57 = vld [vmem:[%s1108_s1 + $0x220] sm:$0xff]  ;;  %v112_v59 = vld [vmem:[%s1108_s1 + $0x228] sm:$0xff]  ;;  %185 = vmatpush.msra.mxu0 %v47_v56  ;;  %231 = vmatpush.msra.mxu2 %v48_v58  ;;  %v82_v30 = vld [vmem:[%s1108_s1 + $0x138] sm:$0xff] }
  0x1f   :  { %v43_v60 = vld [vmem:[%s1108_s1] sm:$0xff]  ;;  %208 = vmatpush.msra.mxu1 %v111_v57  ;;  %v44_v62 = vld [vmem:[%s1108_s1 + $0x8] sm:$0xff]  ;;  %254 = vmatpush.msra.mxu3 %v112_v59  ;;  %v146_v31 = vld [vmem:[%s1108_s1 + $0x338] sm:$0xff] }
  0x20   :  { %v107_v61 = vld [vmem:[%s1108_s1 + $0x200] sm:$0xff]  ;;  %v108_v63 = vld [vmem:[%s1108_s1 + $0x208] sm:$0xff]  ;;  %186 = vmatpush.msra.mxu0 %v43_v60  ;;  %232 = vmatpush.msra.mxu2 %v44_v62  ;;  %v77_v32 = vld [vmem:[%s1108_s1 + $0x110] sm:$0xff] }
  0x21   :  { %209 = vmatpush.msra.mxu1 %v107_v61  ;;  %255 = vmatpush.msra.mxu3 %v108_v63  ;;  %v815_v4 = vld [vmem:[%s1109_s0] sm:$0xff]  ;;  %v820_v5 = vld [vmem:[%s1109_s0 + $0x8] sm:$0xff]  ;;  %v141_v33 = vld [vmem:[%s1108_s1 + $0x310] sm:$0xff] }
  0x22   :  { %263 = vmatpush.msrb.mxu0 %v105_v0  ;;  %309 = vmatpush.msrb.mxu2 %v106_v2  ;;  %v78_v34 = vld [vmem:[%s1108_s1 + $0x118] sm:$0xff]  ;;  %v73_v36 = vld [vmem:[%s1108_s1 + $0xf0] sm:$0xff] }
  0x23   :  { %286 = vmatpush.msrb.mxu1 %v169_v1  ;;  %332 = vmatpush.msrb.mxu3 %v170_v3  ;;  %v142_v35 = vld [vmem:[%s1108_s1 + $0x318] sm:$0xff]  ;;  %v137_v37 = vld [vmem:[%s1108_s1 + $0x2f0] sm:$0xff] }
  0x24   :  { %233 = vmatmul.f32.vlgmr.msra.gmra.mxu2 %v815_v4  ;;  %256 = vmatmul.f32.vlgmr.msra.gmra.mxu3 %v820_v5  ;;  %v74_v38 = vld [vmem:[%s1108_s1 + $0xf8] sm:$0xff]  ;;  %v69_v40 = vld [vmem:[%s1108_s1 + $0xd0] sm:$0xff] }
  0x25   :  { %264 = vmatpush.msrb.mxu0 %v101_v6  ;;  %287 = vmatpush.msrb.mxu1 %v165_v7  ;;  %v138_v39 = vld [vmem:[%s1108_s1 + $0x2f8] sm:$0xff]  ;;  %v133_v41 = vld [vmem:[%s1108_s1 + $0x2d0] sm:$0xff]  ;;  %v1031_v6 = vld [vmem:[%s1110_s2] sm:$0xf] }
  0x26   :  { %310 = vmatpush.msrb.mxu2 %v102_v8  ;;  %333 = vmatpush.msrb.mxu3 %v166_v9  ;;  %v70_v42 = vld [vmem:[%s1108_s1 + $0xd8] sm:$0xff]  ;;  %v65_v44 = vld [vmem:[%s1108_s1 + $0xb0] sm:$0xff]  ;;  %v385_v7 = vperm.slane %v1031_v6, 1 }
  0x27   :  { %265 = vmatpush.msrb.mxu0 %v97_v10  ;;  %288 = vmatpush.msrb.mxu1 %v161_v11  ;;  %v134_v43 = vld [vmem:[%s1108_s1 + $0x2d8] sm:$0xff]  ;;  %v129_v45 = vld [vmem:[%s1108_s1 + $0x2b0] sm:$0xff] }
  0x28   :  { %311 = vmatpush.msrb.mxu2 %v98_v12  ;;  %334 = vmatpush.msrb.mxu3 %v162_v13  ;;  %v66_v46 = vld [vmem:[%s1108_s1 + $0xb8] sm:$0xff]  ;;  %v61_v48 = vld [vmem:[%s1108_s1 + $0x90] sm:$0xff] }
  0x29   :  { %266 = vmatpush.msrb.mxu0 %v93_v14  ;;  %289 = vmatpush.msrb.mxu1 %v157_v15  ;;  %v130_v47 = vld [vmem:[%s1108_s1 + $0x2b8] sm:$0xff]  ;;  %v125_v49 = vld [vmem:[%s1108_s1 + $0x290] sm:$0xff] }
  0x2a   :  { %312 = vmatpush.msrb.mxu2 %v94_v16  ;;  %335 = vmatpush.msrb.mxu3 %v158_v17  ;;  %v62_v50 = vld [vmem:[%s1108_s1 + $0x98] sm:$0xff]  ;;  %v57_v52 = vld [vmem:[%s1108_s1 + $0x70] sm:$0xff] }
  0x2b   :  { %267 = vmatpush.msrb.mxu0 %v89_v18  ;;  %290 = vmatpush.msrb.mxu1 %v153_v19  ;;  %v126_v51 = vld [vmem:[%s1108_s1 + $0x298] sm:$0xff]  ;;  %v121_v53 = vld [vmem:[%s1108_s1 + $0x270] sm:$0xff] }
  0x2c   :  { %313 = vmatpush.msrb.mxu2 %v90_v20  ;;  %336 = vmatpush.msrb.mxu3 %v154_v21  ;;  %v58_v54 = vld [vmem:[%s1108_s1 + $0x78] sm:$0xff]  ;;  %v53_v56 = vld [vmem:[%s1108_s1 + $0x50] sm:$0xff] }
  0x2d   :  { %187 = vmatmul.f32.vlgmr.msra.gmra.mxu0 %v815_v4  ;;  %210 = vmatmul.f32.vlgmr.msra.gmra.mxu1 %v820_v5  ;;  %v122_v55 = vld [vmem:[%s1108_s1 + $0x278] sm:$0xff]  ;;  %v117_v57 = vld [vmem:[%s1108_s1 + $0x250] sm:$0xff] }
  0x2e   :  { %236 = vmatmul.f32.gmra.mxu2 %v875_v22  ;;  %259 = vmatmul.f32.gmra.mxu3 %v880_v23  ;;  %v54_v58 = vld [vmem:[%s1108_s1 + $0x58] sm:$0xff]  ;;  %v49_v60 = vld [vmem:[%s1108_s1 + $0x30] sm:$0xff] }
  0x2f   :  { %268 = vmatpush.msrb.mxu0 %v85_v24  ;;  %291 = vmatpush.msrb.mxu1 %v149_v25  ;;  %v118_v59 = vld [vmem:[%s1108_s1 + $0x258] sm:$0xff]  ;;  %v113_v61 = vld [vmem:[%s1108_s1 + $0x230] sm:$0xff] }
  0x30   :  { %314 = vmatpush.msrb.mxu2 %v86_v26  ;;  %337 = vmatpush.msrb.mxu3 %v150_v27  ;;  %v50_v62 = vld [vmem:[%s1108_s1 + $0x38] sm:$0xff]  ;;  %v45_v0 = vld [vmem:[%s1108_s1 + $0x10] sm:$0xff] }
  0x31   :  { %269 = vmatpush.msrb.mxu0 %v81_v28  ;;  %292 = vmatpush.msrb.mxu1 %v145_v29  ;;  %v114_v63 = vld [vmem:[%s1108_s1 + $0x238] sm:$0xff]  ;;  %v109_v1 = vld [vmem:[%s1108_s1 + $0x210] sm:$0xff] }
  0x32   :  { %315 = vmatpush.msrb.mxu2 %v82_v30  ;;  %338 = vmatpush.msrb.mxu3 %v146_v31  ;;  %v46_v2 = vld [vmem:[%s1108_s1 + $0x18] sm:$0xff] }
  0x33   :  { %270 = vmatpush.msrb.mxu0 %v77_v32  ;;  %293 = vmatpush.msrb.mxu1 %v141_v33  ;;  %v110_v3 = vld [vmem:[%s1108_s1 + $0x218] sm:$0xff] }
  0x34   :  { %316 = vmatpush.msrb.mxu2 %v78_v34  ;;  %339 = vmatpush.msrb.mxu3 %v142_v35 }
  0x35   :  { %271 = vmatpush.msrb.mxu0 %v73_v36  ;;  %294 = vmatpush.msrb.mxu1 %v137_v37 }
  0x36   :  { %317 = vmatpush.msrb.mxu2 %v74_v38  ;;  %340 = vmatpush.msrb.mxu3 %v138_v39  ;;  %v386_v39 = vperm.slane %v1031_v6, 2 }
  0x37   :  { %190 = vmatmul.f32.gmra.mxu0 %v875_v22  ;;  %213 = vmatmul.f32.gmra.mxu1 %v880_v23 }
  0x38   :  { %272 = vmatpush.msrb.mxu0 %v69_v40  ;;  %295 = vmatpush.msrb.mxu1 %v133_v41 }
  0x39   :  { %318 = vmatpush.msrb.mxu2 %v70_v42  ;;  %341 = vmatpush.msrb.mxu3 %v134_v43 }
  0x3a   :  { %273 = vmatpush.msrb.mxu0 %v65_v44  ;;  %296 = vmatpush.msrb.mxu1 %v129_v45 }
  0x3b   :  { %319 = vmatpush.msrb.mxu2 %v66_v46  ;;  %342 = vmatpush.msrb.mxu3 %v130_v47 }
  0x3c   :  { %274 = vmatpush.msrb.mxu0 %v61_v48  ;;  %297 = vmatpush.msrb.mxu1 %v125_v49 }
  0x3d   :  { %320 = vmatpush.msrb.mxu2 %v62_v50  ;;  %343 = vmatpush.msrb.mxu3 %v126_v51 }
  0x3e   :  { %275 = vmatpush.msrb.mxu0 %v57_v52  ;;  %298 = vmatpush.msrb.mxu1 %v121_v53 }
  0x3f   :  { %321 = vmatpush.msrb.mxu2 %v58_v54  ;;  %344 = vmatpush.msrb.mxu3 %v122_v55 }
  0x40   :  { %276 = vmatpush.msrb.mxu0 %v53_v56  ;;  %299 = vmatpush.msrb.mxu1 %v117_v57 }
  0x41   :  { %322 = vmatpush.msrb.mxu2 %v54_v58  ;;  %345 = vmatpush.msrb.mxu3 %v118_v59  ;;  %v387_v58 = vperm.slane %v1031_v6, 3 }
  0x42   :  { %277 = vmatpush.msrb.mxu0 %v49_v60  ;;  %300 = vmatpush.msrb.mxu1 %v113_v61 }
  0x43   :  { %323 = vmatpush.msrb.mxu2 %v50_v62  ;;  %346 = vmatpush.msrb.mxu3 %v114_v63 }
  0x44   :  { %278 = vmatpush.msrb.mxu0 %v45_v0  ;;  %301 = vmatpush.msrb.mxu1 %v109_v1 }
  0x45   :  { %324 = vmatpush.msrb.mxu2 %v46_v2  ;;  %347 = vmatpush.msrb.mxu3 %v110_v3 }
  0x46   :  { %279 = vmatmul.f32.vlgmr.msrb.gmra.mxu0 %v815_v4  ;;  %302 = vmatmul.f32.vlgmr.msrb.gmra.mxu1 %v820_v5 }
  0x47   :  { %325 = vmatmul.f32.vlgmr.msrb.gmra.mxu2 %v815_v4  ;;  %348 = vmatmul.f32.vlgmr.msrb.gmra.mxu3 %v820_v5  ;;  %v384_v5 = vperm.slane %v1031_v6, 0 }
  0x4e   :  { %282 = vmatmul.f32.gmra.mxu0 %v875_v22  ;;  %305 = vmatmul.f32.gmra.mxu1 %v880_v23 }
  0x4f   :  { %328 = vmatmul.f32.gmra.mxu2 %v875_v22  ;;  %351 = vmatmul.f32.gmra.mxu3 %v880_v23 }
  0xa7   :  { %v234_v8 = vpop.f32.mrf.mxu2  ;;  %v257_v9 = vpop.f32.mrf.mxu3 }
  0xa8   :  { %v258_v4 = vadd.f32 %v257_v9, %v234_v8 }
  0xaa   :  { %v393_v10 = vadd.f32 %v385_v7, %v258_v4  ;;  %v188_v11 = vpop.f32.mrf.mxu0  ;;  %v211_v12 = vpop.f32.mrf.mxu1 }
  0xab   :  { %v212_v13 = vadd.f32 %v211_v12, %v188_v11 }
  0xac   :  { %v540_v14 = vmul.f32 -1.442695, %v393_v10 }
  0xad   :  { %v392_v15 = vadd.f32 %v384_v5, %v212_v13 }
  0xae   :  { %546 = vpow2.f32 %v540_v14  ;;  %v400_v14 = vld [vmem:[%s1111_s3] sm:$0xff] }
  0xaf   :  { %v542_v16 = vmul.f32 -1.442695, %v392_v15 }
  0xb1   :  { %548 = vpow2.f32 %v542_v16  ;;  %v237_v17 = vpop.f32.mrf.mxu2  ;;  %v260_v18 = vpop.f32.mrf.mxu3 }
  0xb2   :  { %v261_v19 = vadd.f32 %v260_v18, %v237_v17 }
  0xb4   :  { %v547_v20 = vpop.eup %546  ;;  %v397_v21 = vadd.f32 %v385_v7, %v261_v19  ;;  %v191_v22 = vpop.f32.mrf.mxu0 }
  0xb5   :  { %v214_v23 = vpop.f32.mrf.mxu1  ;;  %v408_v24 = vadd.f32 1.0, %v547_v20 }
  0xb6   :  { %v215_v25 = vadd.f32 %v214_v23, %v191_v22  ;;  %v541_v26 = vmul.f32 -1.442695, %v397_v21 }
  0xb7   :  { %v549_v27 = vpop.eup %548  ;;  %550 = vrcp.f32 %v408_v24  ;;  %vm415_vm0 = vweird.f32 %v408_v24  ;;  %v421_v42 = vand.u32 2147483648, %v408_v24  ;;  %v419_v47 = vand.u32 2147483647, %v408_v24 }
  0xb8   :  { %v396_v28 = vadd.f32 %v384_v5, %v215_v25  ;;  %v448_v29 = vadd.f32 1.0, %v549_v27  ;;  %552 = vpow2.f32 %v541_v26 }
  0xb9   :  { %v422_v56 = vor.u32 1.1754944e-38, %v421_v42  ;;  %vm1052_vm6 = vcmp.eq.f32.partialorder %v419_v47, 8.507059e+37 }
  0xba   :  { %v543_v30 = vmul.f32 -1.442695, %v396_v28  ;;  %554 = vrcp.f32 %v448_v29  ;;  %vm455_vm2 = vweird.f32 %v448_v29  ;;  %v461_v48 = vand.u32 2147483648, %v448_v29 }
  0xbb   :  { %v459_v52 = vand.u32 2147483647, %v448_v29 }
  0xbc   :  { %556 = vpow2.f32 %v543_v30  ;;  %v462_v61 = vor.u32 1.1754944e-38, %v461_v48 }
  0xbd   :  { %v551_v31 = vpop.eup %550  ;;  %vm1061_vm8 = vcmp.eq.f32.partialorder %v459_v52, 8.507059e+37 }
  0xbe   :  { %v553_v32 = vpop.eup %552  ;;  %v411_v33 = vmul.f32 %v551_v31, %v408_v24  ;;  %vm416_vm1 = vweird.f32 %v551_v31 }
  0xbf   :  { %v1035_v34 = vadd.f32 1.0, %v553_v32  ;;  %vm1042_vm4 = vmor %vm415_vm0, %vm416_vm1 }
  0xc0   :  { %v555_v35 = vpop.eup %554  ;;  %v412_v36 = vsub.f32 1.0, %v411_v33 }
  0xc1   :  { %v451_v38 = vmul.f32 %v555_v35, %v448_v29  ;;  %558 = vrcp.f32 %v1035_v34  ;;  %vm456_vm3 = vweird.f32 %v555_v35  ;;  %vm430_vm7 = vweird.f32 %v1035_v34 }
  0xc2   :  { %v557_v37 = vpop.eup %556  ;;  %v413_v40 = vmul.f32 %v551_v31, %v412_v36  ;;  %vm1046_vm5 = vmor %vm455_vm2, %vm456_vm3  ;;  %v436_v3 = vand.u32 2147483648, %v1035_v34  ;;  %v434_v8 = vand.u32 2147483647, %v1035_v34 }
  0xc3   :  { %v1039_v41 = vadd.f32 1.0, %v557_v37  ;;  %v452_v43 = vsub.f32 1.0, %v451_v38  ;;  %v280_v44 = vpop.f32.mrf.mxu0  ;;  %v303_v45 = vpop.f32.mrf.mxu1  ;;  %v401_v38 = vld [vmem:[%s1111_s3 + $0x8] sm:$0xff] }
  0xc4   :  { %v304_v46 = vadd.f32 %v303_v45, %v280_v44  ;;  %v414_v50 = vadd.f32 %v551_v31, %v413_v40  ;;  %v437_v22 = vor.u32 1.1754944e-38, %v436_v3  ;;  %vm435_vm13 = vcmp.eq.f32.partialorder %v434_v8, 8.507059e+37 }
  0xc5   :  { %560 = vrcp.f32 %v1039_v41  ;;  %v453_v51 = vmul.f32 %v555_v35, %v452_v43  ;;  %v474_v9 = vand.u32 2147483647, %v1039_v41  ;;  %v476_v12 = vand.u32 2147483648, %v1039_v41 }
  0xc6   :  { %v394_v53 = vadd.f32 %v386_v39, %v304_v46  ;;  %v418_v62 = vsel %vm1042_vm4, %v551_v31, %v414_v50  ;;  %vm470_vm10 = vweird.f32 %v1039_v41 }
  0xc7   :  { %v559_v55 = vpop.eup %558  ;;  %v454_v57 = vadd.f32 %v555_v35, %v453_v51  ;;  %v423_v15 = vsel %vm1052_vm6, %v422_v56, %v418_v62  ;;  %vm475_vm15 = vcmp.eq.f32.partialorder %v474_v9, 8.507059e+37  ;;  %v477_v30 = vor.u32 1.1754944e-38, %v476_v12 }
  0xc8   :  { %v426_v59 = vmul.f32 %v559_v55, %v1035_v34  ;;  %562 = vtanh.f32 %v394_v53  ;;  %vm431_vm9 = vweird.f32 %v559_v55  ;;  %v440_v25 = vmul.f32 %v423_v15, %v400_v14 }
  0xc9   :  { %v458_v63 = vsel %vm1046_vm5, %v555_v35, %v454_v57  ;;  %vm1081_vm12 = vmor %vm430_vm7, %vm431_vm9 }
  0xca   :  { %v427_v2 = vsub.f32 1.0, %v426_v59  ;;  %v326_v6 = vpop.f32.mrf.mxu2  ;;  %v349_v7 = vpop.f32.mrf.mxu3  ;;  %v463_v16 = vsel %vm1061_vm8, %v462_v61, %v458_v63 }
  0xcb   :  { %v561_v1 = vpop.eup %560  ;;  %v350_v5 = vadd.f32 %v349_v7, %v326_v6  ;;  %v283_v10 = vpop.f32.mrf.mxu0 }
  0xcc   :  { %v466_v4 = vmul.f32 %v561_v1, %v1039_v41  ;;  %v306_v11 = vpop.f32.mrf.mxu1  ;;  %v428_v13 = vmul.f32 %v559_v55, %v427_v2  ;;  %vm471_vm11 = vweird.f32 %v561_v1 }
  0xcd   :  { %v307_v17 = vadd.f32 %v306_v11, %v283_v10  ;;  %v395_v19 = vadd.f32 %v387_v58, %v350_v5  ;;  %vm1085_vm14 = vmor %vm470_vm10, %vm471_vm11 }
  0xce   :  { %v467_v18 = vsub.f32 1.0, %v466_v4  ;;  %v563_v20 = vpop.eup %562  ;;  %v429_v24 = vadd.f32 %v559_v55, %v428_v13 }
  0xcf   :  { %v398_v23 = vadd.f32 %v386_v39, %v307_v17  ;;  %v482_v26 = vmul.f32 %v563_v20, %v463_v16  ;;  %v544_v27 = vmul.f32 -1.442695, %v395_v19 }
  0xd0   :  { %v468_v28 = vmul.f32 %v561_v1, %v467_v18  ;;  %v433_v32 = vsel %vm1081_vm12, %v559_v55, %v429_v24 }
  0xd1   :  { %564 = vtanh.f32 %v398_v23  ;;  %v484_v31 = vadd.f32 %v482_v26, %v440_v25  ;;  %v438_v39 = vsel %vm435_vm13, %v437_v22, %v433_v32 }
  0xd2   :  { %566 = vpow2.f32 %v544_v27  ;;  %v469_v33 = vadd.f32 %v561_v1, %v468_v28  ;;  %v329_v34 = vpop.f32.mrf.mxu2  ;;  %v352_v35 = vpop.f32.mrf.mxu3  ;;  %v441_v44 = vmul.f32 %v438_v39, %v401_v38 }
  0xd3   :  { %530 = vst [vmem:[%s1112_s5] sm:$0xff] %v484_v31  ;;  %v353_v37 = vadd.f32 %v352_v35, %v329_v34 }
  0xd4   :  { %v473_v36 = vsel %vm1085_vm14, %v561_v1, %v469_v33 }
  0xd5   :  { %v478_v40 = vsel %vm475_vm15, %v477_v30, %v473_v36  ;;  %v399_v41 = vadd.f32 %v387_v58, %v353_v37 }
  0xd7   :  { %v565_v42 = vpop.eup %564  ;;  %v545_v46 = vmul.f32 -1.442695, %v399_v41 }
  0xd8   :  { %v567_v43 = vpop.eup %566  ;;  %v483_v45 = vmul.f32 %v565_v42, %v478_v40 }
  0xd9   :  { %v492_v47 = vadd.f32 1.0, %v567_v43  ;;  %568 = vpow2.f32 %v545_v46 }
  0xda   :  { %v485_v48 = vadd.f32 %v483_v45, %v441_v44 }
  0xdb   :  { %570 = vrcp.f32 %v492_v47  ;;  %v505_v54 = vand.u32 2147483648, %v492_v47  ;;  %v503_v56 = vand.u32 2147483647, %v492_v47  ;;  %vm499_vm1 = vweird.f32 %v492_v47 }
  0xdc   :  { %531 = vst [vmem:[%s1112_s5 + $0x8] sm:$0xff] %v485_v48 }
  0xdd   :  { %v506_v59 = vor.u32 1.1754944e-38, %v505_v54  ;;  %vm504_vm3 = vcmp.eq.f32.partialorder %v503_v56, 8.507059e+37 }
  0xdf   :  { %v569_v49 = vpop.eup %568 }
  0xe0   :  { %v493_v51 = vadd.f32 1.0, %v569_v49 }
  0xe1   :  { %v571_v50 = vpop.eup %570 }
  0xe2   :  { %v495_v52 = vmul.f32 %v571_v50, %v492_v47  ;;  %572 = vrcp.f32 %v493_v51  ;;  %vm500_vm0 = vweird.f32 %v571_v50  ;;  %v520_v2 = vand.u32 2147483648, %v493_v51 }
  0xe3   :  { %574 = vtanh.f32 %v484_v31  ;;  %vm501_vm2 = vmor %vm499_vm1, %vm500_vm0  ;;  %v518_v6 = vand.u32 2147483647, %v493_v51  ;;  %vm514_vm5 = vweird.f32 %v493_v51 }
  0xe4   :  { %v496_v53 = vsub.f32 1.0, %v495_v52  ;;  %576 = vtanh.f32 %v485_v48  ;;  %v521_v8 = vor.u32 1.1754944e-38, %v520_v2 }
  0xe5   :  { %vm519_vm7 = vcmp.eq.f32.partialorder %v518_v6, 8.507059e+37 }
  0xe6   :  { %v497_v55 = vmul.f32 %v571_v50, %v496_v53 }
  0xe8   :  { %v498_v57 = vadd.f32 %v571_v50, %v497_v55  ;;  %v573_v58 = vpop.eup %572 }
  0xe9   :  { %v510_v61 = vmul.f32 %v573_v58, %v493_v51  ;;  %v575_v62 = vpop.eup %574  ;;  %vm515_vm4 = vweird.f32 %v573_v58 }
  0xea   :  { %v502_v60 = vsel %vm501_vm2, %v571_v50, %v498_v57  ;;  %vm516_vm6 = vmor %vm514_vm5, %vm515_vm4  ;;  %v577_v4 = vpop.eup %576 }
  0xeb   :  { %v507_v63 = vsel %vm504_vm3, %v506_v59, %v502_v60  ;;  %v511_v1 = vsub.f32 1.0, %v510_v61 }
  0xec   :  { %v526_v0 = vmul.f32 %v575_v62, %v507_v63 }
  0xed   :  { %v512_v3 = vmul.f32 %v573_v58, %v511_v1 }
  0xee   :  { %528 = vst [vmem:[%s1113_s4] sm:$0xff] %v526_v0 }
  0xef   :  { %v513_v7 = vadd.f32 %v573_v58, %v512_v3 }
  0xf1   :  { %v517_v9 = vsel %vm516_vm6, %v573_v58, %v513_v7 }
  0xf2   :  { %v522_v5 = vsel %vm519_vm7, %v521_v8, %v517_v9 }
  0xf3   :  { %v527_v10 = vmul.f32 %v577_v4, %v522_v5 }
  0xf5   :  { %529 = vst [vmem:[%s1113_s4 + $0x8] sm:$0xff] %v527_v10 }

// kernel: mog_lstm_cell.2
= control target key start
LH: loop header
LB: loop body
LE: loop exit
PB: predicated region body
PF: predicated region fallthrough
CT: control target
= control target key end

     0   :  { %s501_s2 = inlined_call_operand.vmem [shape: f32[128,128], index: 2, kind: input, shape index: {}]   ;;  %s502_s3 = inlined_call_operand.vmem [shape: f32[128,128], index: 3, kind: input, shape index: {}]   ;;  %s503_s1 = inlined_call_operand.vmem [shape: f32[16,128], index: 1, kind: input, shape index: {}]   ;;  %s504_s0 = inlined_call_operand.vmem [shape: f32[16,128], index: 0, kind: input, shape index: {}]   ;;  %s505_s4 = inlined_call_operand.vmem [shape: f32[16,256], index: 4, kind: output, shape index: {}]  }
   0x1   :  { %v280_v0 = vld [vmem:[%s501_s2 + $0x78] sm:$0xff]  ;;  %v285_v1 = vld [vmem:[%s501_s2 + $0x70] sm:$0xff]  ;;  %v292_v2 = vld [vmem:[%s501_s2 + $0x68] sm:$0xff] }
   0x2   :  { %37 = vmatpush.msra.mxu0 %v280_v0  ;;  %115 = vmatpush.msra.mxu2 %v280_v0  ;;  %v299_v3 = vld [vmem:[%s501_s2 + $0x60] sm:$0xff]  ;;  %v306_v4 = vld [vmem:[%s501_s2 + $0x58] sm:$0xff]  ;;  %v313_v5 = vld [vmem:[%s501_s2 + $0x50] sm:$0xff] }
   0x3   :  { %v83_v6 = vld [vmem:[%s502_s3 + $0x78] sm:$0xff]  ;;  %v82_v7 = vld [vmem:[%s502_s3 + $0x70] sm:$0xff]  ;;  %v325_v8 = vld [vmem:[%s501_s2 + $0x48] sm:$0xff] }
   0x4   :  { %38 = vmatpush.msra.mxu0 %v285_v1  ;;  %116 = vmatpush.msra.mxu2 %v285_v1  ;;  %v81_v9 = vld [vmem:[%s502_s3 + $0x68] sm:$0xff]  ;;  %v335_v10 = vld [vmem:[%s501_s2 + $0x40] sm:$0xff]  ;;  %v345_v12 = vld [vmem:[%s501_s2 + $0x38] sm:$0xff] }
   0x5   :  { %84 = vmatpush.msra.mxu1 %v83_v6  ;;  %146 = vmatpush.msra.mxu3 %v83_v6  ;;  %v80_v11 = vld [vmem:[%s502_s3 + $0x60] sm:$0xff]  ;;  %v79_v13 = vld [vmem:[%s502_s3 + $0x58] sm:$0xff]  ;;  %v355_v14 = vld [vmem:[%s501_s2 + $0x30] sm:$0xff] }
   0x6   :  { %39 = vmatpush.msra.mxu0 %v292_v2  ;;  %117 = vmatpush.msra.mxu2 %v292_v2  ;;  %v78_v15 = vld [vmem:[%s502_s3 + $0x50] sm:$0xff]  ;;  %v365_v16 = vld [vmem:[%s501_s2 + $0x28] sm:$0xff]  ;;  %v375_v18 = vld [vmem:[%s501_s2 + $0x20] sm:$0xff] }
   0x7   :  { %85 = vmatpush.msra.mxu1 %v82_v7  ;;  %147 = vmatpush.msra.mxu3 %v82_v7  ;;  %v77_v17 = vld [vmem:[%s502_s3 + $0x48] sm:$0xff]  ;;  %v76_v19 = vld [vmem:[%s502_s3 + $0x40] sm:$0xff]  ;;  %v385_v20 = vld [vmem:[%s501_s2 + $0x18] sm:$0xff] }
   0x8   :  { %40 = vmatpush.msra.mxu0 %v299_v3  ;;  %118 = vmatpush.msra.mxu2 %v299_v3  ;;  %v75_v21 = vld [vmem:[%s502_s3 + $0x38] sm:$0xff]  ;;  %v395_v22 = vld [vmem:[%s501_s2 + $0x10] sm:$0xff]  ;;  %v402_v23 = vld [vmem:[%s501_s2 + $0x8] sm:$0xff] }
   0x9   :  { %86 = vmatpush.msra.mxu1 %v81_v9  ;;  %148 = vmatpush.msra.mxu3 %v81_v9  ;;  %v409_v24 = vld [vmem:[%s501_s2] sm:$0xff]  ;;  %v427_v26 = vld [vmem:[%s503_s1 + $0x8] sm:$0xff]  ;;  %v74_v27 = vld [vmem:[%s502_s3 + $0x30] sm:$0xff] }
   0xa   :  { %41 = vmatpush.msra.mxu0 %v306_v4  ;;  %119 = vmatpush.msra.mxu2 %v306_v4  ;;  %v416_v25 = vld [vmem:[%s503_s1] sm:$0xff]  ;;  %v73_v28 = vld [vmem:[%s502_s3 + $0x28] sm:$0xff]  ;;  %v71_v30 = vld [vmem:[%s502_s3 + $0x18] sm:$0xff] }
   0xb   :  { %87 = vmatpush.msra.mxu1 %v80_v11  ;;  %149 = vmatpush.msra.mxu3 %v80_v11  ;;  %v72_v29 = vld [vmem:[%s502_s3 + $0x20] sm:$0xff]  ;;  %v70_v31 = vld [vmem:[%s502_s3 + $0x10] sm:$0xff]  ;;  %v69_v32 = vld [vmem:[%s502_s3 + $0x8] sm:$0xff] }
   0xc   :  { %42 = vmatpush.msra.mxu0 %v313_v5  ;;  %120 = vmatpush.msra.mxu2 %v313_v5  ;;  %v68_v33 = vld [vmem:[%s502_s3] sm:$0xff]  ;;  %v18_v43 = vld [vmem:[%s504_s0 + $0x8] sm:$0xff] }
   0xd   :  { %88 = vmatpush.msra.mxu1 %v79_v13  ;;  %150 = vmatpush.msra.mxu3 %v79_v13  ;;  %v17_v39 = vld [vmem:[%s504_s0] sm:$0xff] }
   0xe   :  { %43 = vmatpush.msra.mxu0 %v325_v8  ;;  %121 = vmatpush.msra.mxu2 %v325_v8 }
   0xf   :  { %89 = vmatpush.msra.mxu1 %v78_v15  ;;  %151 = vmatpush.msra.mxu3 %v78_v15 }
  0x10   :  { %44 = vmatpush.msra.mxu0 %v335_v10  ;;  %122 = vmatpush.msra.mxu2 %v335_v10 }
  0x11   :  { %90 = vmatpush.msra.mxu1 %v77_v17  ;;  %152 = vmatpush.msra.mxu3 %v77_v17 }
  0x12   :  { %45 = vmatpush.msra.mxu0 %v345_v12  ;;  %123 = vmatpush.msra.mxu2 %v345_v12 }
  0x13   :  { %91 = vmatpush.msra.mxu1 %v76_v19  ;;  %153 = vmatpush.msra.mxu3 %v76_v19 }
  0x14   :  { %46 = vmatpush.msra.mxu0 %v355_v14  ;;  %124 = vmatpush.msra.mxu2 %v355_v14 }
  0x15   :  { %92 = vmatpush.msra.mxu1 %v75_v21  ;;  %154 = vmatpush.msra.mxu3 %v75_v21 }
  0x16   :  { %47 = vmatpush.msra.mxu0 %v365_v16  ;;  %125 = vmatpush.msra.mxu2 %v365_v16 }
  0x17   :  { %93 = vmatpush.msra.mxu1 %v74_v27  ;;  %155 = vmatpush.msra.mxu3 %v74_v27 }
  0x18   :  { %48 = vmatpush.msra.mxu0 %v375_v18  ;;  %126 = vmatpush.msra.mxu2 %v375_v18 }
  0x19   :  { %94 = vmatpush.msra.mxu1 %v73_v28  ;;  %156 = vmatpush.msra.mxu3 %v73_v28 }
  0x1a   :  { %49 = vmatpush.msra.mxu0 %v385_v20  ;;  %127 = vmatpush.msra.mxu2 %v385_v20 }
  0x1b   :  { %95 = vmatpush.msra.mxu1 %v72_v29  ;;  %157 = vmatpush.msra.mxu3 %v72_v29 }
  0x1c   :  { %50 = vmatpush.msra.mxu0 %v395_v22  ;;  %128 = vmatpush.msra.mxu2 %v395_v22 }
  0x1d   :  { %96 = vmatpush.msra.mxu1 %v71_v30  ;;  %158 = vmatpush.msra.mxu3 %v71_v30 }
  0x1e   :  { %51 = vmatpush.msra.mxu0 %v402_v23  ;;  %129 = vmatpush.msra.mxu2 %v402_v23 }
  0x1f   :  { %97 = vmatpush.msra.mxu1 %v70_v31  ;;  %159 = vmatpush.msra.mxu3 %v70_v31 }
  0x20   :  { %52 = vmatpush.msra.mxu0 %v409_v24  ;;  %130 = vmatpush.msra.mxu2 %v409_v24 }
  0x21   :  { %53 = vmatmul.f32.vlgmr.msra.gmra.mxu0 %v416_v25  ;;  %98 = vmatpush.msra.mxu1 %v69_v32 }
  0x22   :  { %177 = vmatpush.msrb.mxu0 %v280_v0  ;;  %160 = vmatpush.msra.mxu3 %v69_v32 }
  0x23   :  { %99 = vmatpush.msra.mxu1 %v68_v33 }
  0x24   :  { %178 = vmatpush.msrb.mxu0 %v285_v1  ;;  %161 = vmatpush.msra.mxu3 %v68_v33 }
  0x25   :  { %216 = vmatpush.msrb.mxu1 %v280_v0 }
  0x26   :  { %179 = vmatpush.msrb.mxu0 %v292_v2 }
  0x27   :  { %217 = vmatpush.msrb.mxu1 %v285_v1 }
  0x28   :  { %180 = vmatpush.msrb.mxu0 %v299_v3 }
  0x29   :  { %56 = vmatmul.f32.gmra.mxu0 %v427_v26  ;;  %218 = vmatpush.msrb.mxu1 %v292_v2 }
  0x2a   :  { %181 = vmatpush.msrb.mxu0 %v306_v4 }
  0x2b   :  { %219 = vmatpush.msrb.mxu1 %v299_v3 }
  0x2c   :  { %182 = vmatpush.msrb.mxu0 %v313_v5 }
  0x2d   :  { %220 = vmatpush.msrb.mxu1 %v306_v4 }
  0x2e   :  { %183 = vmatpush.msrb.mxu0 %v325_v8 }
  0x2f   :  { %221 = vmatpush.msrb.mxu1 %v313_v5 }
  0x30   :  { %184 = vmatpush.msrb.mxu0 %v335_v10 }
  0x31   :  { %222 = vmatpush.msrb.mxu1 %v325_v8 }
  0x32   :  { %185 = vmatpush.msrb.mxu0 %v345_v12 }
  0x33   :  { %223 = vmatpush.msrb.mxu1 %v335_v10 }
  0x34   :  { %186 = vmatpush.msrb.mxu0 %v355_v14 }
  0x35   :  { %224 = vmatpush.msrb.mxu1 %v345_v12 }
  0x36   :  { %187 = vmatpush.msrb.mxu0 %v365_v16 }
  0x37   :  { %225 = vmatpush.msrb.mxu1 %v355_v14 }
  0x38   :  { %188 = vmatpush.msrb.mxu0 %v375_v18 }
  0x39   :  { %226 = vmatpush.msrb.mxu1 %v365_v16 }
  0x3a   :  { %189 = vmatpush.msrb.mxu0 %v385_v20 }
  0x3b   :  { %227 = vmatpush.msrb.mxu1 %v375_v18 }
  0x3c   :  { %190 = vmatpush.msrb.mxu0 %v395_v22 }
  0x3d   :  { %228 = vmatpush.msrb.mxu1 %v385_v20 }
  0x3e   :  { %191 = vmatpush.msrb.mxu0 %v402_v23 }
  0x3f   :  { %229 = vmatpush.msrb.mxu1 %v395_v22 }
  0x40   :  { %192 = vmatpush.msrb.mxu0 %v409_v24 }
  0x41   :  { %230 = vmatpush.msrb.mxu1 %v402_v23 }
  0x43   :  { %231 = vmatpush.msrb.mxu1 %v409_v24 }
  0x9e   :  { %v54_v34 = vpop.f32.mrf.mxu0 }
  0x9f   :  { %v60_v35 = vmul.f32 0.5, %v54_v34 }
  0xa1   :  { %232 = vtanh.f32 %v60_v35 }
  0xa6   :  { %v57_v36 = vpop.f32.mrf.mxu0 }
  0xa7   :  { %v233_v37 = vpop.eup %232  ;;  %v61_v38 = vmul.f32 0.5, %v57_v36 }
  0xa8   :  { %v64_v40 = vadd.f32 1.0, %v233_v37 }
  0xa9   :  { %234 = vtanh.f32 %v61_v38 }
  0xaa   :  { %v66_v41 = vmul.f32 %v64_v40, %v17_v39 }
  0xac   :  { %100 = vmatmul.f32.vlgmr.msra.gmra.mxu1 %v66_v41 }
  0xaf   :  { %v235_v42 = vpop.eup %234 }
  0xb0   :  { %v65_v44 = vadd.f32 1.0, %v235_v42 }
  0xb2   :  { %v67_v45 = vmul.f32 %v65_v44, %v18_v43 }
  0xb4   :  { %103 = vmatmul.f32.gmra.mxu1 %v67_v45 }
 0x129   :  { %v101_v46 = vpop.f32.mrf.mxu1 }
 0x12a   :  { %v107_v47 = vmul.f32 0.5, %v101_v46 }
 0x12c   :  { %236 = vtanh.f32 %v107_v47 }
 0x131   :  { %v104_v48 = vpop.f32.mrf.mxu1 }
 0x132   :  { %v237_v49 = vpop.eup %236  ;;  %v108_v50 = vmul.f32 0.5, %v104_v48 }
 0x133   :  { %v111_v51 = vadd.f32 1.0, %v237_v49 }
 0x134   :  { %238 = vtanh.f32 %v108_v50 }
 0x135   :  { %v113_v52 = vmul.f32 %v111_v51, %v416_v25 }
 0x137   :  { %131 = vmatmul.f32.vlgmr.msra.gmra.mxu2 %v113_v52 }
 0x13a   :  { %v239_v53 = vpop.eup %238 }
 0x13b   :  { %v112_v54 = vadd.f32 1.0, %v239_v53 }
 0x13d   :  { %v114_v55 = vmul.f32 %v112_v54, %v427_v26 }
 0x13f   :  { %134 = vmatmul.f32.gmra.mxu2 %v114_v55 }
 0x1ba   :  { %v132_v56 = vpop.f32.mrf.mxu2 }
 0x1bb   :  { %v138_v57 = vmul.f32 0.5, %v132_v56 }
 0x1bd   :  { %240 = vtanh.f32 %v138_v57 }
 0x1c2   :  { %v135_v58 = vpop.f32.mrf.mxu2 }
 0x1c3   :  { %v241_v59 = vpop.eup %240  ;;  %v139_v60 = vmul.f32 0.5, %v135_v58 }
 0x1c4   :  { %v142_v61 = vadd.f32 1.0, %v241_v59 }
 0x1c5   :  { %242 = vtanh.f32 %v139_v60 }
 0x1c6   :  { %v144_v62 = vmul.f32 %v142_v61, %v66_v41 }
 0x1c8   :  { %162 = vmatmul.f32.vlgmr.msra.gmra.mxu3 %v144_v62 }
 0x1cb   :  { %v243_v63 = vpop.eup %242 }
 0x1cc   :  { %v143_v0 = vadd.f32 1.0, %v243_v63 }
 0x1ce   :  { %v145_v1 = vmul.f32 %v143_v0, %v67_v45 }
 0x1d0   :  { %165 = vmatmul.f32.gmra.mxu3 %v145_v1 }
 0x24b   :  { %v163_v2 = vpop.f32.mrf.mxu3 }
 0x24c   :  { %v169_v3 = vmul.f32 0.5, %v163_v2 }
 0x24e   :  { %244 = vtanh.f32 %v169_v3 }
 0x253   :  { %v166_v4 = vpop.f32.mrf.mxu3 }
 0x254   :  { %v245_v5 = vpop.eup %244  ;;  %v170_v6 = vmul.f32 0.5, %v166_v4 }
 0x255   :  { %v173_v7 = vadd.f32 1.0, %v245_v5 }
 0x256   :  { %246 = vtanh.f32 %v170_v6 }
 0x257   :  { %v175_v8 = vmul.f32 %v173_v7, %v113_v52 }
 0x259   :  { %193 = vmatmul.f32.vlgmr.msrb.gmra.mxu0 %v175_v8  ;;  %210 = vst [vmem:[%s505_s4 + $0x8] sm:$0xff] %v175_v8 }
 0x25c   :  { %v247_v9 = vpop.eup %246 }
 0x25d   :  { %v174_v10 = vadd.f32 1.0, %v247_v9 }
 0x25f   :  { %v176_v11 = vmul.f32 %v174_v10, %v114_v55 }
 0x261   :  { %196 = vmatmul.f32.vlgmr.msrb.gmra.mxu1 %v176_v11  ;;  %211 = vst [vmem:[%s505_s4 + $0x18] sm:$0xff] %v176_v11 }
 0x2d6   :  { %v194_v12 = vpop.f32.mrf.mxu0 }
 0x2d7   :  { %v200_v13 = vmul.f32 0.5, %v194_v12 }
 0x2d9   :  { %248 = vtanh.f32 %v200_v13 }
 0x2de   :  { %v197_v14 = vpop.f32.mrf.mxu1 }
 0x2df   :  { %v249_v15 = vpop.eup %248  ;;  %v201_v16 = vmul.f32 0.5, %v197_v14 }
 0x2e0   :  { %v204_v17 = vadd.f32 1.0, %v249_v15 }
 0x2e1   :  { %250 = vtanh.f32 %v201_v16 }
 0x2e2   :  { %v206_v18 = vmul.f32 %v204_v17, %v144_v62 }
 0x2e4   :  { %208 = vst [vmem:[%s505_s4] sm:$0xff] %v206_v18 }
 0x2e7   :  { %v251_v19 = vpop.eup %250 }
 0x2e8   :  { %v205_v20 = vadd.f32 1.0, %v251_v19 }
 0x2ea   :  { %v207_v21 = vmul.f32 %v205_v20, %v145_v1 }
 0x2ec   :  { %209 = vst [vmem:[%s505_s4 + $0x10] sm:$0xff] %v207_v21 }

// kernel: mog_lstm_cell.3
= control target key start
LH: loop header
LB: loop body
LE: loop exit
PB: predicated region body
PF: predicated region fallthrough
CT: control target
= control target key end

     0   :  { %s1108_s1 = inlined_call_operand.vmem [shape: f32[256,512], index: 1, kind: input, shape index: {}]   ;;  %s1109_s0 = inlined_call_operand.vmem [shape: f32[16,256], index: 0, kind: input, shape index: {}]   ;;  %s1110_s2 = inlined_call_operand.vmem [shape: f32[1,512], index: 2, kind: input, shape index: {}]   ;;  %s1111_s3 = inlined_call_operand.vmem [shape: f32[16,128], index: 3, kind: input, shape index: {}]   ;;  %s1112_s5 = inlined_call_operand.vmem [shape: f32[16,128], index: 5, kind: output, shape index: {1}]   ;;  %s1113_s4 = inlined_call_operand.vmem [shape: f32[16,128], index: 4, kind: output, shape index: {0}]  }
   0x1   :  { %v103_v0 = vld [vmem:[%s1108_s1 + $0x1e0] sm:$0xff]  ;;  %v104_v2 = vld [vmem:[%s1108_s1 + $0x1e8] sm:$0xff] }
   0x2   :  { %v167_v1 = vld [vmem:[%s1108_s1 + $0x3e0] sm:$0xff]  ;;  %171 = vmatpush.msra.mxu0 %v103_v0  ;;  %v168_v3 = vld [vmem:[%s1108_s1 + $0x3e8] sm:$0xff]  ;;  %217 = vmatpush.msra.mxu2 %v104_v2  ;;  %v105_v0 = vld [vmem:[%s1108_s1 + $0x1f0] sm:$0xff] }
   0x3   :  { %194 = vmatpush.msra.mxu1 %v167_v1  ;;  %v99_v4 = vld [vmem:[%s1108_s1 + $0x1c0] sm:$0xff]  ;;  %240 = vmatpush.msra.mxu3 %v168_v3  ;;  %v100_v6 = vld [vmem:[%s1108_s1 + $0x1c8] sm:$0xff]  ;;  %v169_v1 = vld [vmem:[%s1108_s1 + $0x3f0] sm:$0xff] }
   0x4   :  { %v163_v5 = vld [vmem:[%s1108_s1 + $0x3c0] sm:$0xff]  ;;  %v164_v7 = vld [vmem:[%s1108_s1 + $0x3c8] sm:$0xff]  ;;  %172 = vmatpush.msra.mxu0 %v99_v4  ;;  %218 = vmatpush.msra.mxu2 %v100_v6  ;;  %v106_v2 = vld [vmem:[%s1108_s1 + $0x1f8] sm:$0xff] }
   0x5   :  { %v95_v8 = vld [vmem:[%s1108_s1 + $0x1a0] sm:$0xff]  ;;  %195 = vmatpush.msra.mxu1 %v163_v5  ;;  %v96_v10 = vld [vmem:[%s1108_s1 + $0x1a8] sm:$0xff]  ;;  %241 = vmatpush.msra.mxu3 %v164_v7  ;;  %v170_v3 = vld [vmem:[%s1108_s1 + $0x3f8] sm:$0xff] }
   0x6   :  { %v159_v9 = vld [vmem:[%s1108_s1 + $0x3a0] sm:$0xff]  ;;  %v160_v11 = vld [vmem:[%s1108_s1 + $0x3a8] sm:$0xff]  ;;  %173 = vmatpush.msra.mxu0 %v95_v8  ;;  %219 = vmatpush.msra.mxu2 %v96_v10  ;;  %v101_v6 = vld [vmem:[%s1108_s1 + $0x1d0] sm:$0xff] }
   0x7   :  { %v91_v12 = vld [vmem:[%s1108_s1 + $0x180] sm:$0xff]  ;;  %196 = vmatpush.msra.mxu1 %v159_v9  ;;  %v92_v14 = vld [vmem:[%s1108_s1 + $0x188] sm:$0xff]  ;;  %242 = vmatpush.msra.mxu3 %v160_v11  ;;  %v165_v7 = vld [vmem:[%s1108_s1 + $0x3d0] sm:$0xff] }
   0x8   :  { %v155_v13 = vld [vmem:[%s1108_s1 + $0x380] sm:$0xff]  ;;  %v156_v15 = vld [vmem:[%s1108_s1 + $0x388] sm:$0xff]  ;;  %174 = vmatpush.msra.mxu0 %v91_v12  ;;  %220 = vmatpush.msra.mxu2 %v92_v14  ;;  %v102_v8 = vld [vmem:[%s1108_s1 + $0x1d8] sm:$0xff] }
   0x9   :  { %v87_v16 = vld [vmem:[%s1108_s1 + $0x160] sm:$0xff]  ;;  %197 = vmatpush.msra.mxu1 %v155_v13  ;;  %v88_v18 = vld [vmem:[%s1108_s1 + $0x168] sm:$0xff]  ;;  %243 = vmatpush.msra.mxu3 %v156_v15  ;;  %v166_v9 = vld [vmem:[%s1108_s1 + $0x3d8] sm:$0xff] }
   0xa   :  { %v151_v17 = vld [vmem:[%s1108_s1 + $0x360] sm:$0xff]  ;;  %v152_v19 = vld [vmem:[%s1108_s1 + $0x368] sm:$0xff]  ;;  %175 = vmatpush.msra.mxu0 %v87_v16  ;;  %221 = vmatpush.msra.mxu2 %v88_v18  ;;  %v97_v10 = vld [vmem:[%s1108_s1 + $0x1b0] sm:$0xff] }
   0xb   :  { %v83_v20 = vld [vmem:[%s1108_s1 + $0x140] sm:$0xff]  ;;  %198 = vmatpush.msra.mxu1 %v151_v17  ;;  %v84_v22 = vld [vmem:[%s1108_s1 + $0x148] sm:$0xff]  ;;  %244 = vmatpush.msra.mxu3 %v152_v19  ;;  %v161_v11 = vld [vmem:[%s1108_s1 + $0x3b0] sm:$0xff] }
   0xc   :  { %v147_v21 = vld [vmem:[%s1108_s1 + $0x340] sm:$0xff]  ;;  %v148_v23 = vld [vmem:[%s1108_s1 + $0x348] sm:$0xff]  ;;  %176 = vmatpush.msra.mxu0 %v83_v20  ;;  %222 = vmatpush.msra.mxu2 %v84_v22  ;;  %v98_v12 = vld [vmem:[%s1108_s1 + $0x1b8] sm:$0xff] }
   0xd   :  { %v79_v24 = vld [vmem:[%s1108_s1 + $0x120] sm:$0xff]  ;;  %199 = vmatpush.msra.mxu1 %v147_v21  ;;  %v80_v26 = vld [vmem:[%s1108_s1 + $0x128] sm:$0xff]  ;;  %245 = vmatpush.msra.mxu3 %v148_v23  ;;  %v162_v13 = vld [vmem:[%s1108_s1 + $0x3b8] sm:$0xff] }
   0xe   :  { %v143_v25 = vld [vmem:[%s1108_s1 + $0x320] sm:$0xff]  ;;  %v144_v27 = vld [vmem:[%s1108_s1 + $0x328] sm:$0xff]  ;;  %177 = vmatpush.msra.mxu0 %v79_v24  ;;  %223 = vmatpush.msra.mxu2 %v80_v26  ;;  %v93_v14 = vld [vmem:[%s1108_s1 + $0x190] sm:$0xff] }
   0xf   :  { %v75_v28 = vld [vmem:[%s1108_s1 + $0x100] sm:$0xff]  ;;  %200 = vmatpush.msra.mxu1 %v143_v25  ;;  %v76_v30 = vld [vmem:[%s1108_s1 + $0x108] sm:$0xff]  ;;  %246 = vmatpush.msra.mxu3 %v144_v27  ;;  %v157_v15 = vld [vmem:[%s1108_s1 + $0x390] sm:$0xff] }
  0x10   :  { %v139_v29 = vld [vmem:[%s1108_s1 + $0x300] sm:$0xff]  ;;  %v140_v31 = vld [vmem:[%s1108_s1 + $0x308] sm:$0xff]  ;;  %178 = vmatpush.msra.mxu0 %v75_v28  ;;  %224 = vmatpush.msra.mxu2 %v76_v30  ;;  %v94_v16 = vld [vmem:[%s1108_s1 + $0x198] sm:$0xff] }
  0x11   :  { %v71_v32 = vld [vmem:[%s1108_s1 + $0xe0] sm:$0xff]  ;;  %201 = vmatpush.msra.mxu1 %v139_v29  ;;  %v72_v34 = vld [vmem:[%s1108_s1 + $0xe8] sm:$0xff]  ;;  %247 = vmatpush.msra.mxu3 %v140_v31  ;;  %v158_v17 = vld [vmem:[%s1108_s1 + $0x398] sm:$0xff] }
  0x12   :  { %v135_v33 = vld [vmem:[%s1108_s1 + $0x2e0] sm:$0xff]  ;;  %v136_v35 = vld [vmem:[%s1108_s1 + $0x2e8] sm:$0xff]  ;;  %179 = vmatpush.msra.mxu0 %v71_v32  ;;  %225 = vmatpush.msra.mxu2 %v72_v34  ;;  %v89_v18 = vld [vmem:[%s1108_s1 + $0x170] sm:$0xff] }
  0x13   :  { %v67_v36 = vld [vmem:[%s1108_s1 + $0xc0] sm:$0xff]  ;;  %202 = vmatpush.msra.mxu1 %v135_v33  ;;  %v68_v38 = vld [vmem:[%s1108_s1 + $0xc8] sm:$0xff]  ;;  %248 = vmatpush.msra.mxu3 %v136_v35  ;;  %v153_v19 = vld [vmem:[%s1108_s1 + $0x370] sm:$0xff] }
  0x14   :  { %v131_v37 = vld [vmem:[%s1108_s1 + $0x2c0] sm:$0xff]  ;;  %v132_v39 = vld [vmem:[%s1108_s1 + $0x2c8] sm:$0xff]  ;;  %180 = vmatpush.msra.mxu0 %v67_v36  ;;  %226 = vmatpush.msra.mxu2 %v68_v38  ;;  %v90_v20 = vld [vmem:[%s1108_s1 + $0x178] sm:$0xff] }
  0x15   :  { %v63_v40 = vld [vmem:[%s1108_s1 + $0xa0] sm:$0xff]  ;;  %203 = vmatpush.msra.mxu1 %v131_v37  ;;  %v64_v42 = vld [vmem:[%s1108_s1 + $0xa8] sm:$0xff]  ;;  %249 = vmatpush.msra.mxu3 %v132_v39  ;;  %v154_v21 = vld [vmem:[%s1108_s1 + $0x378] sm:$0xff] }
  0x16   :  { %v127_v41 = vld [vmem:[%s1108_s1 + $0x2a0] sm:$0xff]  ;;  %v128_v43 = vld [vmem:[%s1108_s1 + $0x2a8] sm:$0xff]  ;;  %181 = vmatpush.msra.mxu0 %v63_v40  ;;  %227 = vmatpush.msra.mxu2 %v64_v42  ;;  %v875_v22 = vld [vmem:[%s1109_s0 + $0x10] sm:$0xff] }
  0x17   :  { %v59_v44 = vld [vmem:[%s1108_s1 + $0x80] sm:$0xff]  ;;  %204 = vmatpush.msra.mxu1 %v127_v41  ;;  %v60_v46 = vld [vmem:[%s1108_s1 + $0x88] sm:$0xff]  ;;  %250 = vmatpush.msra.mxu3 %v128_v43  ;;  %v880_v23 = vld [vmem:[%s1109_s0 + $0x18] sm:$0xff] }
  0x18   :  { %v123_v45 = vld [vmem:[%s1108_s1 + $0x280] sm:$0xff]  ;;  %v124_v47 = vld [vmem:[%s1108_s1 + $0x288] sm:$0xff]  ;;  %182 = vmatpush.msra.mxu0 %v59_v44  ;;  %228 = vmatpush.msra.mxu2 %v60_v46  ;;  %v85_v24 = vld [vmem:[%s1108_s1 + $0x150] sm:$0xff] }
  0x19   :  { %v55_v48 = vld [vmem:[%s1108_s1 + $0x60] sm:$0xff]  ;;  %205 = vmatpush.msra.mxu1 %v123_v45  ;;  %v56_v50 = vld [vmem:[%s1108_s1 + $0x68] sm:$0xff]  ;;  %251 = vmatpush.msra.mxu3 %v124_v47  ;;  %v149_v25 = vld [vmem:[%s1108_s1 + $0x350] sm:$0xff] }
  0x1a   :  { %v119_v49 = vld [vmem:[%s1108_s1 + $0x260] sm:$0xff]  ;;  %v120_v51 = vld [vmem:[%s1108_s1 + $0x268] sm:$0xff]  ;;  %183 = vmatpush.msra.mxu0 %v55_v48  ;;  %229 = vmatpush.msra.mxu2 %v56_v50  ;;  %v86_v26 = vld [vmem:[%s1108_s1 + $0x158] sm:$0xff] }
  0x1b   :  { %v51_v52 = vld [vmem:[%s1108_s1 + $0x40] sm:$0xff]  ;;  %206 = vmatpush.msra.mxu1 %v119_v49  ;;  %v52_v54 = vld [vmem:[%s1108_s1 + $0x48] sm:$0xff]  ;;  %252 = vmatpush.msra.mxu3 %v120_v51  ;;  %v150_v27 = vld [vmem:[%s1108_s1 + $0x358] sm:$0xff] }
  0x1c   :  { %v115_v53 = vld [vmem:[%s1108_s1 + $0x240] sm:$0xff]  ;;  %v116_v55 = vld [vmem:[%s1108_s1 + $0x248] sm:$0xff]  ;;  %184 = vmatpush.msra.mxu0 %v51_v52  ;;  %230 = vmatpush.msra.mxu2 %v52_v54  ;;  %v81_v28 = vld [vmem:[%s1108_s1 + $0x130] sm:$0xff] }
  0x1d   :  { %v47_v56 = vld [vmem:[%s1108_s1 + $0x20] sm:$0xff]  ;;  %207 = vmatpush.msra.mxu1 %v115_v53  ;;  %v48_v58 = vld [vmem:[%s1108_s1 + $0x28] sm:$0xff]  ;;  %253 = vmatpush.msra.mxu3 %v116_v55  ;;  %v145_v29 = vld [vmem:[%s1108_s1 + $0x330] sm:$0xff] }
  0x1e   :  { %v111_v57 = vld [vmem:[%s1108_s1 + $0x220] sm:$0xff]  ;;  %v112_v59 = vld [vmem:[%s1108_s1 + $0x228] sm:$0xff]  ;;  %185 = vmatpush.msra.mxu0 %v47_v56  ;;  %231 = vmatpush.msra.mxu2 %v48_v58  ;;  %v82_v30 = vld [vmem:[%s1108_s1 + $0x138] sm:$0xff] }
  0x1f   :  { %v43_v60 = vld [vmem:[%s1108_s1] sm:$0xff]  ;;  %208 = vmatpush.msra.mxu1 %v111_v57  ;;  %v44_v62 = vld [vmem:[%s1108_s1 + $0x8] sm:$0xff]  ;;  %254 = vmatpush.msra.mxu3 %v112_v59  ;;  %v146_v31 = vld [vmem:[%s1108_s1 + $0x338] sm:$0xff] }
  0x20   :  { %v107_v61 = vld [vmem:[%s1108_s1 + $0x200] sm:$0xff]  ;;  %v108_v63 = vld [vmem:[%s1108_s1 + $0x208] sm:$0xff]  ;;  %186 = vmatpush.msra.mxu0 %v43_v60  ;;  %232 = vmatpush.msra.mxu2 %v44_v62  ;;  %v77_v32 = vld [vmem:[%s1108_s1 + $0x110] sm:$0xff] }
  0x21   :  { %209 = vmatpush.msra.mxu1 %v107_v61  ;;  %255 = vmatpush.msra.mxu3 %v108_v63  ;;  %v815_v4 = vld [vmem:[%s1109_s0] sm:$0xff]  ;;  %v820_v5 = vld [vmem:[%s1109_s0 + $0x8] sm:$0xff]  ;;  %v141_v33 = vld [vmem:[%s1108_s1 + $0x310] sm:$0xff] }
  0x22   :  { %263 = vmatpush.msrb.mxu0 %v105_v0  ;;  %309 = vmatpush.msrb.mxu2 %v106_v2  ;;  %v78_v34 = vld [vmem:[%s1108_s1 + $0x118] sm:$0xff]  ;;  %v73_v36 = vld [vmem:[%s1108_s1 + $0xf0] sm:$0xff] }
  0x23   :  { %286 = vmatpush.msrb.mxu1 %v169_v1  ;;  %332 = vmatpush.msrb.mxu3 %v170_v3  ;;  %v142_v35 = vld [vmem:[%s1108_s1 + $0x318] sm:$0xff]  ;;  %v137_v37 = vld [vmem:[%s1108_s1 + $0x2f0] sm:$0xff] }
  0x24   :  { %233 = vmatmul.f32.vlgmr.msra.gmra.mxu2 %v815_v4  ;;  %256 = vmatmul.f32.vlgmr.msra.gmra.mxu3 %v820_v5  ;;  %v74_v38 = vld [vmem:[%s1108_s1 + $0xf8] sm:$0xff]  ;;  %v69_v40 = vld [vmem:[%s1108_s1 + $0xd0] sm:$0xff] }
  0x25   :  { %264 = vmatpush.msrb.mxu0 %v101_v6  ;;  %287 = vmatpush.msrb.mxu1 %v165_v7  ;;  %v138_v39 = vld [vmem:[%s1108_s1 + $0x2f8] sm:$0xff]  ;;  %v133_v41 = vld [vmem:[%s1108_s1 + $0x2d0] sm:$0xff]  ;;  %v1031_v6 = vld [vmem:[%s1110_s2] sm:$0xf] }
  0x26   :  { %310 = vmatpush.msrb.mxu2 %v102_v8  ;;  %333 = vmatpush.msrb.mxu3 %v166_v9  ;;  %v70_v42 = vld [vmem:[%s1108_s1 + $0xd8] sm:$0xff]  ;;  %v65_v44 = vld [vmem:[%s1108_s1 + $0xb0] sm:$0xff]  ;;  %v385_v7 = vperm.slane %v1031_v6, 1 }
  0x27   :  { %265 = vmatpush.msrb.mxu0 %v97_v10  ;;  %288 = vmatpush.msrb.mxu1 %v161_v11  ;;  %v134_v43 = vld [vmem:[%s1108_s1 + $0x2d8] sm:$0xff]  ;;  %v129_v45 = vld [vmem:[%s1108_s1 + $0x2b0] sm:$0xff] }
  0x28   :  { %311 = vmatpush.msrb.mxu2 %v98_v12  ;;  %334 = vmatpush.msrb.mxu3 %v162_v13  ;;  %v66_v46 = vld [vmem:[%s1108_s1 + $0xb8] sm:$0xff]  ;;  %v61_v48 = vld [vmem:[%s1108_s1 + $0x90] sm:$0xff] }
  0x29   :  { %266 = vmatpush.msrb.mxu0 %v93_v14  ;;  %289 = vmatpush.msrb.mxu1 %v157_v15  ;;  %v130_v47 = vld [vmem:[%s1108_s1 + $0x2b8] sm:$0xff]  ;;  %v125_v49 = vld [vmem:[%s1108_s1 + $0x290] sm:$0xff] }
  0x2a   :  { %312 = vmatpush.msrb.mxu2 %v94_v16  ;;  %335 = vmatpush.msrb.mxu3 %v158_v17  ;;  %v62_v50 = vld [vmem:[%s1108_s1 + $0x98] sm:$0xff]  ;;  %v57_v52 = vld [vmem:[%s1108_s1 + $0x70] sm:$0xff] }
  0x2b   :  { %267 = vmatpush.msrb.mxu0 %v89_v18  ;;  %290 = vmatpush.msrb.mxu1 %v153_v19  ;;  %v126_v51 = vld [vmem:[%s1108_s1 + $0x298] sm:$0xff]  ;;  %v121_v53 = vld [vmem:[%s1108_s1 + $0x270] sm:$0xff] }
  0x2c   :  { %313 = vmatpush.msrb.mxu2 %v90_v20  ;;  %336 = vmatpush.msrb.mxu3 %v154_v21  ;;  %v58_v54 = vld [vmem:[%s1108_s1 + $0x78] sm:$0xff]  ;;  %v53_v56 = vld [vmem:[%s1108_s1 + $0x50] sm:$0xff] }
  0x2d   :  { %187 = vmatmul.f32.vlgmr.msra.gmra.mxu0 %v815_v4  ;;  %210 = vmatmul.f32.vlgmr.msra.gmra.mxu1 %v820_v5  ;;  %v122_v55 = vld [vmem:[%s1108_s1 + $0x278] sm:$0xff]  ;;  %v117_v57 = vld [vmem:[%s1108_s1 + $0x250] sm:$0xff] }
  0x2e   :  { %236 = vmatmul.f32.gmra.mxu2 %v875_v22  ;;  %259 = vmatmul.f32.gmra.mxu3 %v880_v23  ;;  %v54_v58 = vld [vmem:[%s1108_s1 + $0x58] sm:$0xff]  ;;  %v49_v60 = vld [vmem:[%s1108_s1 + $0x30] sm:$0xff] }
  0x2f   :  { %268 = vmatpush.msrb.mxu0 %v85_v24  ;;  %291 = vmatpush.msrb.mxu1 %v149_v25  ;;  %v118_v59 = vld [vmem:[%s1108_s1 + $0x258] sm:$0xff]  ;;  %v113_v61 = vld [vmem:[%s1108_s1 + $0x230] sm:$0xff] }
  0x30   :  { %314 = vmatpush.msrb.mxu2 %v86_v26  ;;  %337 = vmatpush.msrb.mxu3 %v150_v27  ;;  %v50_v62 = vld [vmem:[%s1108_s1 + $0x38] sm:$0xff]  ;;  %v45_v0 = vld [vmem:[%s1108_s1 + $0x10] sm:$0xff] }
  0x31   :  { %269 = vmatpush.msrb.mxu0 %v81_v28  ;;  %292 = vmatpush.msrb.mxu1 %v145_v29  ;;  %v114_v63 = vld [vmem:[%s1108_s1 + $0x238] sm:$0xff]  ;;  %v109_v1 = vld [vmem:[%s1108_s1 + $0x210] sm:$0xff] }
  0x32   :  { %315 = vmatpush.msrb.mxu2 %v82_v30  ;;  %338 = vmatpush.msrb.mxu3 %v146_v31  ;;  %v46_v2 = vld [vmem:[%s1108_s1 + $0x18] sm:$0xff] }
  0x33   :  { %270 = vmatpush.msrb.mxu0 %v77_v32  ;;  %293 = vmatpush.msrb.mxu1 %v141_v33  ;;  %v110_v3 = vld [vmem:[%s1108_s1 + $0x218] sm:$0xff] }
  0x34   :  { %316 = vmatpush.msrb.mxu2 %v78_v34  ;;  %339 = vmatpush.msrb.mxu3 %v142_v35 }
  0x35   :  { %271 = vmatpush.msrb.mxu0 %v73_v36  ;;  %294 = vmatpush.msrb.mxu1 %v137_v37 }
  0x36   :  { %317 = vmatpush.msrb.mxu2 %v74_v38  ;;  %340 = vmatpush.msrb.mxu3 %v138_v39  ;;  %v386_v39 = vperm.slane %v1031_v6, 2 }
  0x37   :  { %190 = vmatmul.f32.gmra.mxu0 %v875_v22  ;;  %213 = vmatmul.f32.gmra.mxu1 %v880_v23 }
  0x38   :  { %272 = vmatpush.msrb.mxu0 %v69_v40  ;;  %295 = vmatpush.msrb.mxu1 %v133_v41 }
  0x39   :  { %318 = vmatpush.msrb.mxu2 %v70_v42  ;;  %341 = vmatpush.msrb.mxu3 %v134_v43 }
  0x3a   :  { %273 = vmatpush.msrb.mxu0 %v65_v44  ;;  %296 = vmatpush.msrb.mxu1 %v129_v45 }
  0x3b   :  { %319 = vmatpush.msrb.mxu2 %v66_v46  ;;  %342 = vmatpush.msrb.mxu3 %v130_v47 }
  0x3c   :  { %274 = vmatpush.msrb.mxu0 %v61_v48  ;;  %297 = vmatpush.msrb.mxu1 %v125_v49 }
  0x3d   :  { %320 = vmatpush.msrb.mxu2 %v62_v50  ;;  %343 = vmatpush.msrb.mxu3 %v126_v51 }
  0x3e   :  { %275 = vmatpush.msrb.mxu0 %v57_v52  ;;  %298 = vmatpush.msrb.mxu1 %v121_v53 }
  0x3f   :  { %321 = vmatpush.msrb.mxu2 %v58_v54  ;;  %344 = vmatpush.msrb.mxu3 %v122_v55 }
  0x40   :  { %276 = vmatpush.msrb.mxu0 %v53_v56  ;;  %299 = vmatpush.msrb.mxu1 %v117_v57 }
  0x41   :  { %322 = vmatpush.msrb.mxu2 %v54_v58  ;;  %345 = vmatpush.msrb.mxu3 %v118_v59  ;;  %v387_v58 = vperm.slane %v1031_v6, 3 }
  0x42   :  { %277 = vmatpush.msrb.mxu0 %v49_v60  ;;  %300 = vmatpush.msrb.mxu1 %v113_v61 }
  0x43   :  { %323 = vmatpush.msrb.mxu2 %v50_v62  ;;  %346 = vmatpush.msrb.mxu3 %v114_v63 }
  0x44   :  { %278 = vmatpush.msrb.mxu0 %v45_v0  ;;  %301 = vmatpush.msrb.mxu1 %v109_v1 }
  0x45   :  { %324 = vmatpush.msrb.mxu2 %v46_v2  ;;  %347 = vmatpush.msrb.mxu3 %v110_v3 }
  0x46   :  { %279 = vmatmul.f32.vlgmr.msrb.gmra.mxu0 %v815_v4  ;;  %302 = vmatmul.f32.vlgmr.msrb.gmra.mxu1 %v820_v5 }
  0x47   :  { %325 = vmatmul.f32.vlgmr.msrb.gmra.mxu2 %v815_v4  ;;  %348 = vmatmul.f32.vlgmr.msrb.gmra.mxu3 %v820_v5  ;;  %v384_v5 = vperm.slane %v1031_v6, 0 }
  0x4e   :  { %282 = vmatmul.f32.gmra.mxu0 %v875_v22  ;;  %305 = vmatmul.f32.gmra.mxu1 %v880_v23 }
  0x4f   :  { %328 = vmatmul.f32.gmra.mxu2 %v875_v22  ;;  %351 = vmatmul.f32.gmra.mxu3 %v880_v23 }
  0xa7   :  { %v234_v8 = vpop.f32.mrf.mxu2  ;;  %v257_v9 = vpop.f32.mrf.mxu3 }
  0xa8   :  { %v258_v4 = vadd.f32 %v257_v9, %v234_v8 }
  0xaa   :  { %v393_v10 = vadd.f32 %v385_v7, %v258_v4  ;;  %v188_v11 = vpop.f32.mrf.mxu0  ;;  %v211_v12 = vpop.f32.mrf.mxu1 }
  0xab   :  { %v212_v13 = vadd.f32 %v211_v12, %v188_v11 }
  0xac   :  { %v540_v14 = vmul.f32 -1.442695, %v393_v10 }
  0xad   :  { %v392_v15 = vadd.f32 %v384_v5, %v212_v13 }
  0xae   :  { %546 = vpow2.f32 %v540_v14  ;;  %v400_v14 = vld [vmem:[%s1111_s3] sm:$0xff] }
  0xaf   :  { %v542_v16 = vmul.f32 -1.442695, %v392_v15 }
  0xb1   :  { %548 = vpow2.f32 %v542_v16  ;;  %v237_v17 = vpop.f32.mrf.mxu2  ;;  %v260_v18 = vpop.f32.mrf.mxu3 }
  0xb2   :  { %v261_v19 = vadd.f32 %v260_v18, %v237_v17 }
  0xb4   :  { %v547_v20 = vpop.eup %546  ;;  %v397_v21 = vadd.f32 %v385_v7, %v261_v19  ;;  %v191_v22 = vpop.f32.mrf.mxu0 }
  0xb5   :  { %v214_v23 = vpop.f32.mrf.mxu1  ;;  %v408_v24 = vadd.f32 1.0, %v547_v20 }
  0xb6   :  { %v215_v25 = vadd.f32 %v214_v23, %v191_v22  ;;  %v541_v26 = vmul.f32 -1.442695, %v397_v21 }
  0xb7   :  { %v549_v27 = vpop.eup %548  ;;  %550 = vrcp.f32 %v408_v24  ;;  %vm415_vm0 = vweird.f32 %v408_v24  ;;  %v421_v42 = vand.u32 2147483648, %v408_v24  ;;  %v419_v47 = vand.u32 2147483647, %v408_v24 }
  0xb8   :  { %v396_v28 = vadd.f32 %v384_v5, %v215_v25  ;;  %v448_v29 = vadd.f32 1.0, %v549_v27  ;;  %552 = vpow2.f32 %v541_v26 }
  0xb9   :  { %v422_v56 = vor.u32 1.1754944e-38, %v421_v42  ;;  %vm1052_vm6 = vcmp.eq.f32.partialorder %v419_v47, 8.507059e+37 }
  0xba   :  { %v543_v30 = vmul.f32 -1.442695, %v396_v28  ;;  %554 = vrcp.f32 %v448_v29  ;;  %vm455_vm2 = vweird.f32 %v448_v29  ;;  %v461_v48 = vand.u32 2147483648, %v448_v29 }
  0xbb   :  { %v459_v52 = vand.u32 2147483647, %v448_v29 }
  0xbc   :  { %556 = vpow2.f32 %v543_v30  ;;  %v462_v61 = vor.u32 1.1754944e-38, %v461_v48 }
  0xbd   :  { %v551_v31 = vpop.eup %550  ;;  %vm1061_vm8 = vcmp.eq.f32.partialorder %v459_v52, 8.507059e+37 }
  0xbe   :  { %v553_v32 = vpop.eup %552  ;;  %v411_v33 = vmul.f32 %v551_v31, %v408_v24  ;;  %vm416_vm1 = vweird.f32 %v551_v31 }
  0xbf   :  { %v1035_v34 = vadd.f32 1.0, %v553_v32  ;;  %vm1042_vm4 = vmor %vm415_vm0, %vm416_vm1 }
  0xc0   :  { %v555_v35 = vpop.eup %554  ;;  %v412_v36 = vsub.f32 1.0, %v411_v33 }
  0xc1   :  { %v451_v38 = vmul.f32 %v555_v35, %v448_v29  ;;  %558 = vrcp.f32 %v1035_v34  ;;  %vm456_vm3 = vweird.f32 %v555_v35  ;;  %vm430_vm7 = vweird.f32 %v1035_v34 }
  0xc2   :  { %v557_v37 = vpop.eup %556  ;;  %v413_v40 = vmul.f32 %v551_v31, %v412_v36  ;;  %vm1046_vm5 = vmor %vm455_vm2, %vm456_vm3  ;;  %v436_v3 = vand.u32 2147483648, %v1035_v34  ;;  %v434_v8 = vand.u32 2147483647, %v1035_v34 }
  0xc3   :  { %v1039_v41 = vadd.f32 1.0, %v557_v37  ;;  %v452_v43 = vsub.f32 1.0, %v451_v38  ;;  %v280_v44 = vpop.f32.mrf.mxu0  ;;  %v303_v45 = vpop.f32.mrf.mxu1  ;;  %v401_v38 = vld [vmem:[%s1111_s3 + $0x8] sm:$0xff] }
  0xc4   :  { %v304_v46 = vadd.f32 %v303_v45, %v280_v44  ;;  %v414_v50 = vadd.f32 %v551_v31, %v413_v40  ;;  %v437_v22 = vor.u32 1.1754944e-38, %v436_v3  ;;  %vm435_vm13 = vcmp.eq.f32.partialorder %v434_v8, 8.507059e+37 }
  0xc5   :  { %560 = vrcp.f32 %v1039_v41  ;;  %v453_v51 = vmul.f32 %v555_v35, %v452_v43  ;;  %v474_v9 = vand.u32 2147483647, %v1039_v41  ;;  %v476_v12 = vand.u32 2147483648, %v1039_v41 }
  0xc6   :  { %v394_v53 = vadd.f32 %v386_v39, %v304_v46  ;;  %v418_v62 = vsel %vm1042_vm4, %v551_v31, %v414_v50  ;;  %vm470_vm10 = vweird.f32 %v1039_v41 }
  0xc7   :  { %v559_v55 = vpop.eup %558  ;;  %v454_v57 = vadd.f32 %v555_v35, %v453_v51  ;;  %v423_v15 = vsel %vm1052_vm6, %v422_v56, %v418_v62  ;;  %vm475_vm15 = vcmp.eq.f32.partialorder %v474_v9, 8.507059e+37  ;;  %v477_v30 = vor.u32 1.1754944e-38, %v476_v12 }
  0xc8   :  { %v426_v59 = vmul.f32 %v559_v55, %v1035_v34  ;;  %562 = vtanh.f32 %v394_v53  ;;  %vm431_vm9 = vweird.f32 %v559_v55  ;;  %v440_v25 = vmul.f32 %v423_v15, %v400_v14 }
  0xc9   :  { %v458_v63 = vsel %vm1046_vm5, %v555_v35, %v454_v57  ;;  %vm1081_vm12 = vmor %vm430_vm7, %vm431_vm9 }
  0xca   :  { %v427_v2 = vsub.f32 1.0, %v426_v59  ;;  %v326_v6 = vpop.f32.mrf.mxu2  ;;  %v349_v7 = vpop.f32.mrf.mxu3  ;;  %v463_v16 = vsel %vm1061_vm8, %v462_v61, %v458_v63 }
  0xcb   :  { %v561_v1 = vpop.eup %560  ;;  %v350_v5 = vadd.f32 %v349_v7, %v326_v6  ;;  %v283_v10 = vpop.f32.mrf.mxu0 }
  0xcc   :  { %v466_v4 = vmul.f32 %v561_v1, %v1039_v41  ;;  %v306_v11 = vpop.f32.mrf.mxu1  ;;  %v428_v13 = vmul.f32 %v559_v55, %v427_v2  ;;  %vm471_vm11 = vweird.f32 %v561_v1 }
  0xcd   :  { %v307_v17 = vadd.f32 %v306_v11, %v283_v10  ;;  %v395_v19 = vadd.f32 %v387_v58, %v350_v5  ;;  %vm1085_vm14 = vmor %vm470_vm10, %vm471_vm11 }
  0xce   :  { %v467_v18 = vsub.f32 1.0, %v466_v4  ;;  %v563_v20 = vpop.eup %562  ;;  %v429_v24 = vadd.f32 %v559_v55, %v428_v13 }
  0xcf   :  { %v398_v23 = vadd.f32 %v386_v39, %v307_v17  ;;  %v482_v26 = vmul.f32 %v563_v20, %v463_v16  ;;  %v544_v27 = vmul.f32 -1.442695, %v395_v19 }
  0xd0   :  { %v468_v28 = vmul.f32 %v561_v1, %v467_v18  ;;  %v433_v32 = vsel %vm1081_vm12, %v559_v55, %v429_v24 }
  0xd1   :  { %564 = vtanh.f32 %v398_v23  ;;  %v484_v31 = vadd.f32 %v482_v26, %v440_v25  ;;  %v438_v39 = vsel %vm435_vm13, %v437_v22, %v433_v32 }
  0xd2   :  { %566 = vpow2.f32 %v544_v27  ;;  %v469_v33 = vadd.f32 %v561_v1, %v468_v28  ;;  %v329_v34 = vpop.f32.mrf.mxu2  ;;  %v352_v35 = vpop.f32.mrf.mxu3  ;;  %v441_v44 = vmul.f32 %v438_v39, %v401_v38 }
  0xd3   :  { %530 = vst [vmem:[%s1112_s5] sm:$0xff] %v484_v31  ;;  %v353_v37 = vadd.f32 %v352_v35, %v329_v34 }
  0xd4   :  { %v473_v36 = vsel %vm1085_vm14, %v561_v1, %v469_v33 }
  0xd5   :  { %v478_v40 = vsel %vm475_vm15, %v477_v30, %v473_v36  ;;  %v399_v41 = vadd.f32 %v387_v58, %v353_v37 }
  0xd7   :  { %v565_v42 = vpop.eup %564  ;;  %v545_v46 = vmul.f32 -1.442695, %v399_v41 }
  0xd8   :  { %v567_v43 = vpop.eup %566  ;;  %v483_v45 = vmul.f32 %v565_v42, %v478_v40 }
  0xd9   :  { %v492_v47 = vadd.f32 1.0, %v567_v43  ;;  %568 = vpow2.f32 %v545_v46 }
  0xda   :  { %v485_v48 = vadd.f32 %v483_v45, %v441_v44 }
  0xdb   :  { %570 = vrcp.f32 %v492_v47  ;;  %v505_v54 = vand.u32 2147483648, %v492_v47  ;;  %v503_v56 = vand.u32 2147483647, %v492_v47  ;;  %vm499_vm1 = vweird.f32 %v492_v47 }
  0xdc   :  { %531 = vst [vmem:[%s1112_s5 + $0x8] sm:$0xff] %v485_v48 }
  0xdd   :  { %v506_v59 = vor.u32 1.1754944e-38, %v505_v54  ;;  %vm504_vm3 = vcmp.eq.f32.partialorder %v503_v56, 8.507059e+37 }
  0xdf   :  { %v569_v49 = vpop.eup %568 }
  0xe0   :  { %v493_v51 = vadd.f32 1.0, %v569_v49 }
  0xe1   :  { %v571_v50 = vpop.eup %570 }
  0xe2   :  { %v495_v52 = vmul.f32 %v571_v50, %v492_v47  ;;  %572 = vrcp.f32 %v493_v51  ;;  %vm500_vm0 = vweird.f32 %v571_v50  ;;  %v520_v2 = vand.u32 2147483648, %v493_v51 }
  0xe3   :  { %574 = vtanh.f32 %v484_v31  ;;  %vm501_vm2 = vmor %vm499_vm1, %vm500_vm0  ;;  %v518_v6 = vand.u32 2147483647, %v493_v51  ;;  %vm514_vm5 = vweird.f32 %v493_v51 }
  0xe4   :  { %v496_v53 = vsub.f32 1.0, %v495_v52  ;;  %576 = vtanh.f32 %v485_v48  ;;  %v521_v8 = vor.u32 1.1754944e-38, %v520_v2 }
  0xe5   :  { %vm519_vm7 = vcmp.eq.f32.partialorder %v518_v6, 8.507059e+37 }
  0xe6   :  { %v497_v55 = vmul.f32 %v571_v50, %v496_v53 }
  0xe8   :  { %v498_v57 = vadd.f32 %v571_v50, %v497_v55  ;;  %v573_v58 = vpop.eup %572 }
  0xe9   :  { %v510_v61 = vmul.f32 %v573_v58, %v493_v51  ;;  %v575_v62 = vpop.eup %574  ;;  %vm515_vm4 = vweird.f32 %v573_v58 }
  0xea   :  { %v502_v60 = vsel %vm501_vm2, %v571_v50, %v498_v57  ;;  %vm516_vm6 = vmor %vm514_vm5, %vm515_vm4  ;;  %v577_v4 = vpop.eup %576 }
  0xeb   :  { %v507_v63 = vsel %vm504_vm3, %v506_v59, %v502_v60  ;;  %v511_v1 = vsub.f32 1.0, %v510_v61 }
  0xec   :  { %v526_v0 = vmul.f32 %v575_v62, %v507_v63 }
  0xed   :  { %v512_v3 = vmul.f32 %v573_v58, %v511_v1 }
  0xee   :  { %528 = vst [vmem:[%s1113_s4] sm:$0xff] %v526_v0 }
  0xef   :  { %v513_v7 = vadd.f32 %v573_v58, %v512_v3 }
  0xf1   :  { %v517_v9 = vsel %vm516_vm6, %v573_v58, %v513_v7 }
  0xf2   :  { %v522_v5 = vsel %vm519_vm7, %v521_v8, %v517_v9 }
  0xf3   :  { %v527_v10 = vmul.f32 %v577_v4, %v522_v5 }
  0xf5   :  { %529 = vst [vmem:[%s1113_s4 + $0x8] sm:$0xff] %v527_v10 }

</bundles_post_ra>
